<compile_context>
chip_gen: v5e
topology: v5e:2x2
jax: 0.10.0
libtpu: 0.0.40
codegen_flags: <defaults>
</compile_context>

<pallas_src>
import math
from functools import partial

import jax
import jax.numpy as jnp
from jax import lax
from jax.experimental import pallas as pl
from jax.experimental.pallas import tpu as pltpu

EPS = 1e-5  # PyTorch LayerNorm default


def _layernorm(x, gamma, beta):
    # x: (N, D) f32; gamma/beta: (1, D) f32
    mu = jnp.mean(x, axis=-1, keepdims=True)
    var = jnp.mean((x - mu) ** 2, axis=-1, keepdims=True)
    return (x - mu) * lax.rsqrt(var + EPS) * gamma + beta


def _gelu_exact(x):
    # nn.GELU() default = exact erf formulation
    return 0.5 * x * (1.0 + lax.erf(x * (1.0 / math.sqrt(2.0))))


def transformer_block_kernel(x_ref, wqkv_ref, bqkv_ref, wo_ref,
                             w1_ref, bf1_ref, w2_ref, vecs_ref, o_ref,
                             *, seq, n_heads):
    R, D = x_ref.shape              # R = batch_tile * seq rows in this grid step
    H = n_heads
    hd = D // H
    B = R // seq

    x = x_ref[...]                                                 # (R, D) f32
    xb = x.astype(jnp.bfloat16)

    # ---- fused Q/K/V projection: ONE full-width (R, D) x (D, 3D) MXU matmul ---------
    qkv = jnp.dot(xb, wqkv_ref[...],
                  preferred_element_type=jnp.float32) + bqkv_ref[...]   # (R, 3D) f32
    q2d = qkv[:, 0 * D:1 * D]       # softmax scale already folded into wq/bq
    k2d = qkv[:, 1 * D:2 * D]
    v2d = qkv[:, 2 * D:3 * D]

    # ---- scaled dot-product attention, per head (batched over batch dim) ------------
    ctx_parts = []
    for h in range(H):              # H is small & static; unrolled at trace time
        sl = slice(h * hd, (h + 1) * hd)
        qh = q2d[:, sl].reshape(B, seq, hd).astype(jnp.bfloat16)
        kh = k2d[:, sl].reshape(B, seq, hd).astype(jnp.bfloat16)
        vh = v2d[:, sl].reshape(B, seq, hd).astype(jnp.bfloat16)
        s = jnp.einsum('bqd,bkd->bqk', qh, kh,
                       preferred_element_type=jnp.float32)         # (B, S, S) f32
        s = s - jnp.max(s, axis=-1, keepdims=True)
        p = jnp.exp(s)
        p = p * pl.reciprocal(jnp.sum(p, axis=-1, keepdims=True), approx=True)
        ctx_h = jnp.einsum('bqk,bkd->bqd', p.astype(jnp.bfloat16), vh,
                           preferred_element_type=jnp.float32)     # (B, S, hd) f32
        ctx_parts.append(ctx_h.reshape(R, hd))
    # lane-concatenate heads back into (R, D)  ==  PyTorch transpose(1,2).view(B,S,D)
    ctx = jnp.concatenate(ctx_parts, axis=-1).astype(jnp.bfloat16)

    vecs = vecs_ref[...]                                           # (6, D) f32
    bo, g1, be1, bf2, g2, be2 = (vecs[i:i + 1] for i in range(6))

    # ---- output projection: ONE (R, D) x (D, D) matmul (== concat + Linear) ---------
    mha = jnp.dot(ctx, wo_ref[...], preferred_element_type=jnp.float32) + bo
    # dropout(p=0.0) is identity
    y = _layernorm(mha + x, g1, be1)                               # (R, D) f32

    # ---- FFN: Linear -> GELU -> Linear -> GELU -> Dropout(id) -> LayerNorm ----------
    h1 = _gelu_exact(jnp.dot(y.astype(jnp.bfloat16), w1_ref[...],
                             preferred_element_type=jnp.float32) + bf1_ref[...])
    h1 = h1.astype(jnp.bfloat16)    # keep only bf16 copy of the largest activation
    h2 = _gelu_exact(jnp.dot(h1, w2_ref[...],
                             preferred_element_type=jnp.float32) + bf2)
    o_ref[...] = _layernorm(h2 + y, g2, be2).astype(o_ref.dtype)


def _prepare_operands(params, n_heads):
    """Wrapper-side (free, XLA) layout work: QKV packing, scale fold, bf16 cast."""
    (wq, bq, wk, bk, wv, bv, wo, bo,
     g1, be1, w1, bf1, w2, bf2, g2, be2) = params
    D = wq.shape[0]
    hd = D // n_heads
    F = w1.shape[1]
    scale = 1.0 / math.sqrt(hd)

    # Fold the softmax 1/sqrt(hd) scale into the q projection (weights + bias).
    wqkv = jnp.concatenate([wq * scale, wk, wv], axis=1).astype(jnp.bfloat16)  # (D, 3D)
    bqkv = jnp.concatenate([bq * scale, bk, bv]).reshape(1, 3 * D)             # (1, 3D) f32
    vecs = jnp.stack([bo, g1, be1, bf2, g2, be2], axis=0)                      # (6, D) f32
    return (wqkv, bqkv, wo.astype(jnp.bfloat16),
            w1.astype(jnp.bfloat16), bf1.reshape(1, F),
            w2.astype(jnp.bfloat16), vecs)


def _vmem_limit_bytes():
    # Per-generation VMEM budget with headroom: ~48 MiB on v7x (64 MiB parts),
    # ~96 MiB on v5e/v6e (128 MiB parts).
    try:
        cap = pltpu.get_tpu_info().vmem_capacity_bytes
        return int(min(cap * 3 // 4, 112 * 1024 * 1024))
    except Exception:
        return 64 * 1024 * 1024


def transformer_block(x, params, n_heads=4, batch_tile=1):
    B, S, D = x.shape
    assert D % n_heads == 0
    assert B % batch_tile == 0
    ops = _prepare_operands(params, n_heads)
    wqkv, bqkv, wo, w1, bf1, w2, vecs = ops
    F = w1.shape[1]

    bt = batch_tile
    R = bt * S                       # rows per grid step
    grid = (B // bt,)

    def rows(b):                     # row-tile block index
        return (b, 0)

    def resident(arr):               # constant index_map -> DMA'd once, stays resident
        nd = arr.ndim
        return pl.BlockSpec(arr.shape, lambda b, _nd=nd: (0,) * _nd)

    kern = partial(transformer_block_kernel, seq=S, n_heads=n_heads)

    # Advisory cost estimate for the XLA scheduler.
    BS = B * S
    flops = int(2 * BS * D * 3 * D        # fused QKV
                + 4 * B * S * S * D       # QK^T + PV
                + 2 * BS * D * D          # output projection
                + 4 * BS * D * F)         # fc1 + fc2
    transcendentals = int(B * n_heads * S * S + BS * (F + D))
    bytes_accessed = int(2 * BS * D * 4                      # x in + out (f32)
                         + 2 * (3 * D * D + D * D + 2 * D * F)  # bf16 weights
                         + (3 * D + F + 6 * D) * 4)             # biases / LN vectors

    out2d = pl.pallas_call(
        kern,
        out_shape=jax.ShapeDtypeStruct((B * S, D), x.dtype),
        grid_spec=pltpu.PrefetchScalarGridSpec(
            num_scalar_prefetch=0,
            grid=grid,
            in_specs=[pl.BlockSpec((R, D), rows),
                      resident(wqkv), resident(bqkv), resident(wo),
                      resident(w1), resident(bf1), resident(w2), resident(vecs)],
            out_specs=pl.BlockSpec((R, D), rows)),
        compiler_params=pltpu.CompilerParams(
            dimension_semantics=("parallel",),
            vmem_limit_bytes=_vmem_limit_bytes()),
        cost_estimate=pl.CostEstimate(flops=flops,
                                      transcendentals=transcendentals,
                                      bytes_accessed=bytes_accessed),
    )(x.reshape(B * S, D), *ops)
    return out2d.reshape(B, S, D)


# ----------------------------- parameters & reference ---------------------------------

def _xavier_uniform(key, fan_in, fan_out):
    bound = math.sqrt(6.0 / (fan_in + fan_out))
    return jax.random.uniform(key, (fan_in, fan_out), jnp.float32, -bound, bound)


def init_params(key, d_model, n_heads):
    # TransformerBlock(input_size=d, hidden_size=d, output_size=d, drop_out=0.0, n_heads)
    #   MHA: q/k/v/out = Linear(d, d); LayerNorm(d)
    #   FFN(hidden_size=d, hidden_size*4=4d, output_size=d):
    #     fc1 = Linear(d, 4d*4 = 16d), fc2 = Linear(16d, d), LayerNorm(d)
    d = d_model
    ffn_inner = 4 * (4 * d)
    ks = jax.random.split(key, 6)
    zeros = lambda n: jnp.zeros((n,), jnp.float32)
    ones = lambda n: jnp.ones((n,), jnp.float32)
    return [
        _xavier_uniform(ks[0], d, d), zeros(d),                   # wq, bq   (stored (in, out))
        _xavier_uniform(ks[1], d, d), zeros(d),                   # wk, bk
        _xavier_uniform(ks[2], d, d), zeros(d),                   # wv, bv
        _xavier_uniform(ks[3], d, d), zeros(d),                   # wo, bo
        ones(d), zeros(d),                                        # MHA LayerNorm gamma/beta
        _xavier_uniform(ks[4], d, ffn_inner), zeros(ffn_inner),   # fc1
        _xavier_uniform(ks[5], ffn_inner, d), zeros(d),           # fc2
        ones(d), zeros(d),                                        # FFN LayerNorm gamma/beta
    ]


def transformer_block_reference(x, params, n_heads):
    # Pure-JAX f32 mirror of the PyTorch forward (dropout p=0).
    (wq, bq, wk, bk, wv, bv, wo, bo,
     g1, be1, w1, bf1, w2, bf2, g2, be2) = params
    B, S, D = x.shape
    hd = D // n_heads

    def ln(v, g, b):
        mu = jnp.mean(v, axis=-1, keepdims=True)
        var = jnp.mean((v - mu) ** 2, axis=-1, keepdims=True)
        return (v - mu) / jnp.sqrt(var + EPS) * g + b

    def split(t):  # (B, S, D) -> (B, H, S, hd)
        return t.reshape(B, S, n_heads, hd).transpose(0, 2, 1, 3)

    q, k, v = x @ wq + bq, x @ wk + bk, x @ wv + bv
    qh, kh, vh = split(q), split(k), split(v)
    s = (qh @ jnp.swapaxes(kh, -1, -2)) / math.sqrt(hd)
    p = jax.nn.softmax(s, axis=-1)
    ctx = (p @ vh).transpose(0, 2, 1, 3).reshape(B, S, D)
    y = ln(ctx @ wo + bo + x, g1, be1)
    h1 = jax.nn.gelu(y @ w1 + bf1, approximate=False)
    h2 = jax.nn.gelu(h1 @ w2 + bf2, approximate=False)
    return ln(h2 + y, g2, be2)


if __name__ == "__main__":
    B, S, D, N_HEADS = 2, 8, 32, 4   # input_size = hidden_size = output_size = 32

    key = jax.random.PRNGKey(0)
    kx, kp = jax.random.split(key)
    x = jax.random.normal(kx, (B, S, D), jnp.float32)
    params = init_params(kp, D, N_HEADS)

    out = jax.block_until_ready(transformer_block(x, params, n_heads=N_HEADS))
    ref = transformer_block_reference(x, params, N_HEADS)

    assert out.shape == (B, S, D)
    assert bool(jnp.all(jnp.isfinite(out)))
    # bf16 MXU operands + approx reciprocal vs. the f32 reference -> loose tolerance.
    err = float(jnp.max(jnp.abs(out - ref)))
    assert err < 0.1, f"max abs err vs reference: {err}"
    print("KERNEL_OK")
</pallas_src>

<mosaic_0001>
module attributes {stable_mosaic.version = 11 : i64} {
  func.func @transformer_block_kernel(%arg0: i32, %arg1: memref<8x32xf32, #tpu.memory_space<vmem>>, %arg2: memref<32x96xbf16, #tpu.memory_space<vmem>>, %arg3: memref<1x96xf32, #tpu.memory_space<vmem>>, %arg4: memref<32x32xbf16, #tpu.memory_space<vmem>>, %arg5: memref<32x512xbf16, #tpu.memory_space<vmem>>, %arg6: memref<1x512xf32, #tpu.memory_space<vmem>>, %arg7: memref<512x32xbf16, #tpu.memory_space<vmem>>, %arg8: memref<6x32xf32, #tpu.memory_space<vmem>>, %arg9: memref<8x32xf32, #tpu.memory_space<vmem>>) attributes {dimension_semantics = [#tpu.dimension_semantics<parallel>], iteration_bounds = array<i64: 2>, scalar_prefetch = 0 : i64, scratch_operands = 0 : i64, tpu.core_type = #tpu.core_type<tc>, window_params = [{transform_indices = @transform_0, window_bounds = array<i64: 8, 32>}, {pipeline_mode = #tpu.pipeline_mode<synchronous>, transform_indices = @transform_1, window_bounds = array<i64: 32, 96>}, {pipeline_mode = #tpu.pipeline_mode<synchronous>, transform_indices = @transform_2, window_bounds = array<i64: 1, 96>}, {pipeline_mode = #tpu.pipeline_mode<synchronous>, transform_indices = @transform_3, window_bounds = array<i64: 32, 32>}, {pipeline_mode = #tpu.pipeline_mode<synchronous>, transform_indices = @transform_4, window_bounds = array<i64: 32, 512>}, {pipeline_mode = #tpu.pipeline_mode<synchronous>, transform_indices = @transform_5, window_bounds = array<i64: 1, 512>}, {pipeline_mode = #tpu.pipeline_mode<synchronous>, transform_indices = @transform_6, window_bounds = array<i64: 512, 32>}, {pipeline_mode = #tpu.pipeline_mode<synchronous>, transform_indices = @transform_7, window_bounds = array<i64: 6, 32>}, {transform_indices = @transform_8, window_bounds = array<i64: 8, 32>}]} {
    %c0 = arith.constant 0 : index
    %c0_0 = arith.constant 0 : index
    %0 = vector.load %arg1[%c0, %c0_0] : memref<8x32xf32, #tpu.memory_space<vmem>>, vector<8x32xf32>
    %1 = arith.truncf %0 : vector<8x32xf32> to vector<8x32xbf16>
    %c0_1 = arith.constant 0 : index
    %c0_2 = arith.constant 0 : index
    %2 = vector.load %arg2[%c0_1, %c0_2] : memref<32x96xbf16, #tpu.memory_space<vmem>>, vector<32x96xbf16>
    %cst = arith.constant dense<0.000000e+00> : vector<8x96xf32>
    %3 = tpu.matmul %1, %2, %cst {dimension_numbers = #tpu.dot_dimension_numbers<[1], [0], [0], [1], [0, 0, 1, 1], [], []>} : vector<8x32xbf16>, vector<32x96xbf16>, vector<8x96xf32> -> vector<8x96xf32>
    %c0_3 = arith.constant 0 : index
    %c0_4 = arith.constant 0 : index
    %4 = vector.load %arg3[%c0_3, %c0_4] : memref<1x96xf32, #tpu.memory_space<vmem>>, vector<1x96xf32>
    %5 = vector.broadcast %4 : vector<1x96xf32> to vector<8x96xf32>
    %6 = arith.addf %3, %5 : vector<8x96xf32>
    %7 = vector.extract_strided_slice %6 {offsets = [0, 0], sizes = [8, 32], strides = [1, 1]} : vector<8x96xf32> to vector<8x32xf32>
    %8 = vector.extract_strided_slice %6 {offsets = [0, 32], sizes = [8, 32], strides = [1, 1]} : vector<8x96xf32> to vector<8x32xf32>
    %9 = vector.extract_strided_slice %6 {offsets = [0, 64], sizes = [8, 32], strides = [1, 1]} : vector<8x96xf32> to vector<8x32xf32>
    %10 = vector.extract_strided_slice %7 {offsets = [0, 0], sizes = [8, 8], strides = [1, 1]} : vector<8x32xf32> to vector<8x8xf32>
    %11 = vector.shape_cast %10 : vector<8x8xf32> to vector<1x8x8xf32>
    %12 = arith.truncf %11 : vector<1x8x8xf32> to vector<1x8x8xbf16>
    %13 = vector.extract_strided_slice %8 {offsets = [0, 0], sizes = [8, 8], strides = [1, 1]} : vector<8x32xf32> to vector<8x8xf32>
    %14 = vector.shape_cast %13 : vector<8x8xf32> to vector<1x8x8xf32>
    %15 = arith.truncf %14 : vector<1x8x8xf32> to vector<1x8x8xbf16>
    %16 = vector.extract_strided_slice %9 {offsets = [0, 0], sizes = [8, 8], strides = [1, 1]} : vector<8x32xf32> to vector<8x8xf32>
    %17 = vector.shape_cast %16 : vector<8x8xf32> to vector<1x8x8xf32>
    %18 = arith.truncf %17 : vector<1x8x8xf32> to vector<1x8x8xbf16>
    "tpu.trace_start"() <{level = 10 : i32, message = "bqd,bkd->bqk"}> : () -> ()
    %cst_5 = arith.constant dense<0.000000e+00> : vector<1x8x8xf32>
    %19 = tpu.matmul %12, %15, %cst_5 {dimension_numbers = #tpu.dot_dimension_numbers<[2], [2], [1], [1], [0, 0, 0, 1, 1, 1], [0], [0]>} : vector<1x8x8xbf16>, vector<1x8x8xbf16>, vector<1x8x8xf32> -> vector<1x8x8xf32>
    "tpu.trace_stop"() : () -> ()
    %cst_6 = arith.constant dense<0xFF800000> : vector<1x8xf32>
    %20 = vector.multi_reduction <maximumf>, %19, %cst_6 [2] : vector<1x8x8xf32> to vector<1x8xf32>
    %21 = vector.shape_cast %20 : vector<1x8xf32> to vector<1x8x1xf32>
    %22 = vector.broadcast %21 : vector<1x8x1xf32> to vector<1x8x8xf32>
    %23 = arith.subf %19, %22 : vector<1x8x8xf32>
    %24 = math.exp %23 : vector<1x8x8xf32>
    %cst_7 = arith.constant dense<0.000000e+00> : vector<1x8xf32>
    %25 = vector.multi_reduction <add>, %24, %cst_7 [2] : vector<1x8x8xf32> to vector<1x8xf32>
    %26 = vector.shape_cast %25 : vector<1x8xf32> to vector<1x8x1xf32>
    %27 = tpu.reciprocal %26 {approx = true} : vector<1x8x1xf32> -> vector<1x8x1xf32>
    %28 = vector.broadcast %27 : vector<1x8x1xf32> to vector<1x8x8xf32>
    %29 = arith.mulf %24, %28 : vector<1x8x8xf32>
    %30 = arith.truncf %29 : vector<1x8x8xf32> to vector<1x8x8xbf16>
    "tpu.trace_start"() <{level = 10 : i32, message = "bqk,bkd->bqd"}> : () -> ()
    %cst_8 = arith.constant dense<0.000000e+00> : vector<1x8x8xf32>
    %31 = tpu.matmul %30, %18, %cst_8 {dimension_numbers = #tpu.dot_dimension_numbers<[2], [1], [1], [2], [0, 0, 0, 1, 1, 2], [0], [0]>} : vector<1x8x8xbf16>, vector<1x8x8xbf16>, vector<1x8x8xf32> -> vector<1x8x8xf32>
    "tpu.trace_stop"() : () -> ()
    %32 = vector.shape_cast %31 : vector<1x8x8xf32> to vector<8x8xf32>
    %33 = vector.extract_strided_slice %7 {offsets = [0, 8], sizes = [8, 8], strides = [1, 1]} : vector<8x32xf32> to vector<8x8xf32>
    %34 = vector.shape_cast %33 : vector<8x8xf32> to vector<1x8x8xf32>
    %35 = arith.truncf %34 : vector<1x8x8xf32> to vector<1x8x8xbf16>
    %36 = vector.extract_strided_slice %8 {offsets = [0, 8], sizes = [8, 8], strides = [1, 1]} : vector<8x32xf32> to vector<8x8xf32>
    %37 = vector.shape_cast %36 : vector<8x8xf32> to vector<1x8x8xf32>
    %38 = arith.truncf %37 : vector<1x8x8xf32> to vector<1x8x8xbf16>
    %39 = vector.extract_strided_slice %9 {offsets = [0, 8], sizes = [8, 8], strides = [1, 1]} : vector<8x32xf32> to vector<8x8xf32>
    %40 = vector.shape_cast %39 : vector<8x8xf32> to vector<1x8x8xf32>
    %41 = arith.truncf %40 : vector<1x8x8xf32> to vector<1x8x8xbf16>
    "tpu.trace_start"() <{level = 10 : i32, message = "bqd,bkd->bqk"}> : () -> ()
    %cst_9 = arith.constant dense<0.000000e+00> : vector<1x8x8xf32>
    %42 = tpu.matmul %35, %38, %cst_9 {dimension_numbers = #tpu.dot_dimension_numbers<[2], [2], [1], [1], [0, 0, 0, 1, 1, 1], [0], [0]>} : vector<1x8x8xbf16>, vector<1x8x8xbf16>, vector<1x8x8xf32> -> vector<1x8x8xf32>
    "tpu.trace_stop"() : () -> ()
    %cst_10 = arith.constant dense<0xFF800000> : vector<1x8xf32>
    %43 = vector.multi_reduction <maximumf>, %42, %cst_10 [2] : vector<1x8x8xf32> to vector<1x8xf32>
    %44 = vector.shape_cast %43 : vector<1x8xf32> to vector<1x8x1xf32>
    %45 = vector.broadcast %44 : vector<1x8x1xf32> to vector<1x8x8xf32>
    %46 = arith.subf %42, %45 : vector<1x8x8xf32>
    %47 = math.exp %46 : vector<1x8x8xf32>
    %cst_11 = arith.constant dense<0.000000e+00> : vector<1x8xf32>
    %48 = vector.multi_reduction <add>, %47, %cst_11 [2] : vector<1x8x8xf32> to vector<1x8xf32>
    %49 = vector.shape_cast %48 : vector<1x8xf32> to vector<1x8x1xf32>
    %50 = tpu.reciprocal %49 {approx = true} : vector<1x8x1xf32> -> vector<1x8x1xf32>
    %51 = vector.broadcast %50 : vector<1x8x1xf32> to vector<1x8x8xf32>
    %52 = arith.mulf %47, %51 : vector<1x8x8xf32>
    %53 = arith.truncf %52 : vector<1x8x8xf32> to vector<1x8x8xbf16>
    "tpu.trace_start"() <{level = 10 : i32, message = "bqk,bkd->bqd"}> : () -> ()
    %cst_12 = arith.constant dense<0.000000e+00> : vector<1x8x8xf32>
    %54 = tpu.matmul %53, %41, %cst_12 {dimension_numbers = #tpu.dot_dimension_numbers<[2], [1], [1], [2], [0, 0, 0, 1, 1, 2], [0], [0]>} : vector<1x8x8xbf16>, vector<1x8x8xbf16>, vector<1x8x8xf32> -> vector<1x8x8xf32>
    "tpu.trace_stop"() : () -> ()
    %55 = vector.shape_cast %54 : vector<1x8x8xf32> to vector<8x8xf32>
    %56 = vector.extract_strided_slice %7 {offsets = [0, 16], sizes = [8, 8], strides = [1, 1]} : vector<8x32xf32> to vector<8x8xf32>
    %57 = vector.shape_cast %56 : vector<8x8xf32> to vector<1x8x8xf32>
    %58 = arith.truncf %57 : vector<1x8x8xf32> to vector<1x8x8xbf16>
    %59 = vector.extract_strided_slice %8 {offsets = [0, 16], sizes = [8, 8], strides = [1, 1]} : vector<8x32xf32> to vector<8x8xf32>
    %60 = vector.shape_cast %59 : vector<8x8xf32> to vector<1x8x8xf32>
    %61 = arith.truncf %60 : vector<1x8x8xf32> to vector<1x8x8xbf16>
    %62 = vector.extract_strided_slice %9 {offsets = [0, 16], sizes = [8, 8], strides = [1, 1]} : vector<8x32xf32> to vector<8x8xf32>
    %63 = vector.shape_cast %62 : vector<8x8xf32> to vector<1x8x8xf32>
    %64 = arith.truncf %63 : vector<1x8x8xf32> to vector<1x8x8xbf16>
    "tpu.trace_start"() <{level = 10 : i32, message = "bqd,bkd->bqk"}> : () -> ()
    %cst_13 = arith.constant dense<0.000000e+00> : vector<1x8x8xf32>
    %65 = tpu.matmul %58, %61, %cst_13 {dimension_numbers = #tpu.dot_dimension_numbers<[2], [2], [1], [1], [0, 0, 0, 1, 1, 1], [0], [0]>} : vector<1x8x8xbf16>, vector<1x8x8xbf16>, vector<1x8x8xf32> -> vector<1x8x8xf32>
    "tpu.trace_stop"() : () -> ()
    %cst_14 = arith.constant dense<0xFF800000> : vector<1x8xf32>
    %66 = vector.multi_reduction <maximumf>, %65, %cst_14 [2] : vector<1x8x8xf32> to vector<1x8xf32>
    %67 = vector.shape_cast %66 : vector<1x8xf32> to vector<1x8x1xf32>
    %68 = vector.broadcast %67 : vector<1x8x1xf32> to vector<1x8x8xf32>
    %69 = arith.subf %65, %68 : vector<1x8x8xf32>
    %70 = math.exp %69 : vector<1x8x8xf32>
    %cst_15 = arith.constant dense<0.000000e+00> : vector<1x8xf32>
    %71 = vector.multi_reduction <add>, %70, %cst_15 [2] : vector<1x8x8xf32> to vector<1x8xf32>
    %72 = vector.shape_cast %71 : vector<1x8xf32> to vector<1x8x1xf32>
    %73 = tpu.reciprocal %72 {approx = true} : vector<1x8x1xf32> -> vector<1x8x1xf32>
    %74 = vector.broadcast %73 : vector<1x8x1xf32> to vector<1x8x8xf32>
    %75 = arith.mulf %70, %74 : vector<1x8x8xf32>
    %76 = arith.truncf %75 : vector<1x8x8xf32> to vector<1x8x8xbf16>
    "tpu.trace_start"() <{level = 10 : i32, message = "bqk,bkd->bqd"}> : () -> ()
    %cst_16 = arith.constant dense<0.000000e+00> : vector<1x8x8xf32>
    %77 = tpu.matmul %76, %64, %cst_16 {dimension_numbers = #tpu.dot_dimension_numbers<[2], [1], [1], [2], [0, 0, 0, 1, 1, 2], [0], [0]>} : vector<1x8x8xbf16>, vector<1x8x8xbf16>, vector<1x8x8xf32> -> vector<1x8x8xf32>
    "tpu.trace_stop"() : () -> ()
    %78 = vector.shape_cast %77 : vector<1x8x8xf32> to vector<8x8xf32>
    %79 = vector.extract_strided_slice %7 {offsets = [0, 24], sizes = [8, 8], strides = [1, 1]} : vector<8x32xf32> to vector<8x8xf32>
    %80 = vector.shape_cast %79 : vector<8x8xf32> to vector<1x8x8xf32>
    %81 = arith.truncf %80 : vector<1x8x8xf32> to vector<1x8x8xbf16>
    %82 = vector.extract_strided_slice %8 {offsets = [0, 24], sizes = [8, 8], strides = [1, 1]} : vector<8x32xf32> to vector<8x8xf32>
    %83 = vector.shape_cast %82 : vector<8x8xf32> to vector<1x8x8xf32>
    %84 = arith.truncf %83 : vector<1x8x8xf32> to vector<1x8x8xbf16>
    %85 = vector.extract_strided_slice %9 {offsets = [0, 24], sizes = [8, 8], strides = [1, 1]} : vector<8x32xf32> to vector<8x8xf32>
    %86 = vector.shape_cast %85 : vector<8x8xf32> to vector<1x8x8xf32>
    %87 = arith.truncf %86 : vector<1x8x8xf32> to vector<1x8x8xbf16>
    "tpu.trace_start"() <{level = 10 : i32, message = "bqd,bkd->bqk"}> : () -> ()
    %cst_17 = arith.constant dense<0.000000e+00> : vector<1x8x8xf32>
    %88 = tpu.matmul %81, %84, %cst_17 {dimension_numbers = #tpu.dot_dimension_numbers<[2], [2], [1], [1], [0, 0, 0, 1, 1, 1], [0], [0]>} : vector<1x8x8xbf16>, vector<1x8x8xbf16>, vector<1x8x8xf32> -> vector<1x8x8xf32>
    "tpu.trace_stop"() : () -> ()
    %cst_18 = arith.constant dense<0xFF800000> : vector<1x8xf32>
    %89 = vector.multi_reduction <maximumf>, %88, %cst_18 [2] : vector<1x8x8xf32> to vector<1x8xf32>
    %90 = vector.shape_cast %89 : vector<1x8xf32> to vector<1x8x1xf32>
    %91 = vector.broadcast %90 : vector<1x8x1xf32> to vector<1x8x8xf32>
    %92 = arith.subf %88, %91 : vector<1x8x8xf32>
    %93 = math.exp %92 : vector<1x8x8xf32>
    %cst_19 = arith.constant dense<0.000000e+00> : vector<1x8xf32>
    %94 = vector.multi_reduction <add>, %93, %cst_19 [2] : vector<1x8x8xf32> to vector<1x8xf32>
    %95 = vector.shape_cast %94 : vector<1x8xf32> to vector<1x8x1xf32>
    %96 = tpu.reciprocal %95 {approx = true} : vector<1x8x1xf32> -> vector<1x8x1xf32>
    %97 = vector.broadcast %96 : vector<1x8x1xf32> to vector<1x8x8xf32>
    %98 = arith.mulf %93, %97 : vector<1x8x8xf32>
    %99 = arith.truncf %98 : vector<1x8x8xf32> to vector<1x8x8xbf16>
    "tpu.trace_start"() <{level = 10 : i32, message = "bqk,bkd->bqd"}> : () -> ()
    %cst_20 = arith.constant dense<0.000000e+00> : vector<1x8x8xf32>
    %100 = tpu.matmul %99, %87, %cst_20 {dimension_numbers = #tpu.dot_dimension_numbers<[2], [1], [1], [2], [0, 0, 0, 1, 1, 2], [0], [0]>} : vector<1x8x8xbf16>, vector<1x8x8xbf16>, vector<1x8x8xf32> -> vector<1x8x8xf32>
    "tpu.trace_stop"() : () -> ()
    %101 = vector.shape_cast %100 : vector<1x8x8xf32> to vector<8x8xf32>
    %102 = tpu.concatenate %32, %55, %78, %101 in 1 : vector<8x8xf32>, vector<8x8xf32>, vector<8x8xf32>, vector<8x8xf32> -> vector<8x32xf32>
    %103 = arith.truncf %102 : vector<8x32xf32> to vector<8x32xbf16>
    %c0_21 = arith.constant 0 : index
    %c0_22 = arith.constant 0 : index
    %104 = vector.load %arg8[%c0_21, %c0_22] : memref<6x32xf32, #tpu.memory_space<vmem>>, vector<6x32xf32>
    %105 = vector.extract_strided_slice %104 {offsets = [0, 0], sizes = [1, 32], strides = [1, 1]} : vector<6x32xf32> to vector<1x32xf32>
    %106 = vector.extract_strided_slice %104 {offsets = [1, 0], sizes = [1, 32], strides = [1, 1]} : vector<6x32xf32> to vector<1x32xf32>
    %107 = vector.extract_strided_slice %104 {offsets = [2, 0], sizes = [1, 32], strides = [1, 1]} : vector<6x32xf32> to vector<1x32xf32>
    %108 = vector.extract_strided_slice %104 {offsets = [3, 0], sizes = [1, 32], strides = [1, 1]} : vector<6x32xf32> to vector<1x32xf32>
    %109 = vector.extract_strided_slice %104 {offsets = [4, 0], sizes = [1, 32], strides = [1, 1]} : vector<6x32xf32> to vector<1x32xf32>
    %110 = vector.extract_strided_slice %104 {offsets = [5, 0], sizes = [1, 32], strides = [1, 1]} : vector<6x32xf32> to vector<1x32xf32>
    %c0_23 = arith.constant 0 : index
    %c0_24 = arith.constant 0 : index
    %111 = vector.load %arg4[%c0_23, %c0_24] : memref<32x32xbf16, #tpu.memory_space<vmem>>, vector<32x32xbf16>
    %cst_25 = arith.constant dense<0.000000e+00> : vector<8x32xf32>
    %112 = tpu.matmul %103, %111, %cst_25 {dimension_numbers = #tpu.dot_dimension_numbers<[1], [0], [0], [1], [0, 0, 1, 1], [], []>} : vector<8x32xbf16>, vector<32x32xbf16>, vector<8x32xf32> -> vector<8x32xf32>
    %113 = vector.broadcast %105 : vector<1x32xf32> to vector<8x32xf32>
    %114 = arith.addf %112, %113 : vector<8x32xf32>
    %115 = arith.addf %114, %0 : vector<8x32xf32>
    %cst_26 = arith.constant dense<0.000000e+00> : vector<8xf32>
    %116 = vector.multi_reduction <add>, %115, %cst_26 [1] : vector<8x32xf32> to vector<8xf32>
    %117 = vector.shape_cast %116 : vector<8xf32> to vector<8x1xf32>
    %cst_27 = arith.constant 3.200000e+01 : f32
    %118 = vector.broadcast %cst_27 : f32 to vector<8x1xf32>
    %119 = arith.divf %117, %118 : vector<8x1xf32>
    %120 = vector.broadcast %119 : vector<8x1xf32> to vector<8x32xf32>
    %121 = arith.subf %115, %120 : vector<8x32xf32>
    %122 = arith.mulf %121, %121 : vector<8x32xf32>
    %cst_28 = arith.constant dense<0.000000e+00> : vector<8xf32>
    %123 = vector.multi_reduction <add>, %122, %cst_28 [1] : vector<8x32xf32> to vector<8xf32>
    %124 = vector.shape_cast %123 : vector<8xf32> to vector<8x1xf32>
    %cst_29 = arith.constant 3.200000e+01 : f32
    %125 = vector.broadcast %cst_29 : f32 to vector<8x1xf32>
    %126 = arith.divf %124, %125 : vector<8x1xf32>
    %127 = vector.broadcast %119 : vector<8x1xf32> to vector<8x32xf32>
    %128 = arith.subf %115, %127 : vector<8x32xf32>
    %cst_30 = arith.constant 9.99999974E-6 : f32
    %129 = vector.broadcast %cst_30 : f32 to vector<8x1xf32>
    %130 = arith.addf %126, %129 : vector<8x1xf32>
    %131 = math.rsqrt %130 : vector<8x1xf32>
    %132 = vector.broadcast %131 : vector<8x1xf32> to vector<8x32xf32>
    %133 = arith.mulf %128, %132 : vector<8x32xf32>
    %134 = vector.broadcast %106 : vector<1x32xf32> to vector<8x32xf32>
    %135 = arith.mulf %133, %134 : vector<8x32xf32>
    %136 = vector.broadcast %107 : vector<1x32xf32> to vector<8x32xf32>
    %137 = arith.addf %135, %136 : vector<8x32xf32>
    %138 = arith.truncf %137 : vector<8x32xf32> to vector<8x32xbf16>
    %c0_31 = arith.constant 0 : index
    %c0_32 = arith.constant 0 : index
    %139 = vector.load %arg5[%c0_31, %c0_32] : memref<32x512xbf16, #tpu.memory_space<vmem>>, vector<32x512xbf16>
    %cst_33 = arith.constant dense<0.000000e+00> : vector<8x512xf32>
    %140 = tpu.matmul %138, %139, %cst_33 {dimension_numbers = #tpu.dot_dimension_numbers<[1], [0], [0], [1], [0, 0, 1, 1], [], []>} : vector<8x32xbf16>, vector<32x512xbf16>, vector<8x512xf32> -> vector<8x512xf32>
    %c0_34 = arith.constant 0 : index
    %c0_35 = arith.constant 0 : index
    %141 = vector.load %arg6[%c0_34, %c0_35] : memref<1x512xf32, #tpu.memory_space<vmem>>, vector<1x512xf32>
    %142 = vector.broadcast %141 : vector<1x512xf32> to vector<8x512xf32>
    %143 = arith.addf %140, %142 : vector<8x512xf32>
    %cst_36 = arith.constant 5.000000e-01 : f32
    %144 = vector.broadcast %cst_36 : f32 to vector<8x512xf32>
    %145 = arith.mulf %144, %143 : vector<8x512xf32>
    %cst_37 = arith.constant 0.707106769 : f32
    %146 = vector.broadcast %cst_37 : f32 to vector<8x512xf32>
    %147 = arith.mulf %143, %146 : vector<8x512xf32>
    %148 = math.erf %147 : vector<8x512xf32>
    %cst_38 = arith.constant 1.000000e+00 : f32
    %149 = vector.broadcast %cst_38 : f32 to vector<8x512xf32>
    %150 = arith.addf %149, %148 : vector<8x512xf32>
    %151 = arith.mulf %145, %150 : vector<8x512xf32>
    %152 = arith.truncf %151 : vector<8x512xf32> to vector<8x512xbf16>
    %c0_39 = arith.constant 0 : index
    %c0_40 = arith.constant 0 : index
    %153 = vector.load %arg7[%c0_39, %c0_40] : memref<512x32xbf16, #tpu.memory_space<vmem>>, vector<512x32xbf16>
    %cst_41 = arith.constant dense<0.000000e+00> : vector<8x32xf32>
    %154 = tpu.matmul %152, %153, %cst_41 {dimension_numbers = #tpu.dot_dimension_numbers<[1], [0], [0], [1], [0, 0, 1, 1], [], []>} : vector<8x512xbf16>, vector<512x32xbf16>, vector<8x32xf32> -> vector<8x32xf32>
    %155 = vector.broadcast %108 : vector<1x32xf32> to vector<8x32xf32>
    %156 = arith.addf %154, %155 : vector<8x32xf32>
    %cst_42 = arith.constant 5.000000e-01 : f32
    %157 = vector.broadcast %cst_42 : f32 to vector<8x32xf32>
    %158 = arith.mulf %157, %156 : vector<8x32xf32>
    %cst_43 = arith.constant 0.707106769 : f32
    %159 = vector.broadcast %cst_43 : f32 to vector<8x32xf32>
    %160 = arith.mulf %156, %159 : vector<8x32xf32>
    %161 = math.erf %160 : vector<8x32xf32>
    %cst_44 = arith.constant 1.000000e+00 : f32
    %162 = vector.broadcast %cst_44 : f32 to vector<8x32xf32>
    %163 = arith.addf %162, %161 : vector<8x32xf32>
    %164 = arith.mulf %158, %163 : vector<8x32xf32>
    %165 = arith.addf %164, %137 : vector<8x32xf32>
    %cst_45 = arith.constant dense<0.000000e+00> : vector<8xf32>
    %166 = vector.multi_reduction <add>, %165, %cst_45 [1] : vector<8x32xf32> to vector<8xf32>
    %167 = vector.shape_cast %166 : vector<8xf32> to vector<8x1xf32>
    %cst_46 = arith.constant 3.200000e+01 : f32
    %168 = vector.broadcast %cst_46 : f32 to vector<8x1xf32>
    %169 = arith.divf %167, %168 : vector<8x1xf32>
    %170 = vector.broadcast %169 : vector<8x1xf32> to vector<8x32xf32>
    %171 = arith.subf %165, %170 : vector<8x32xf32>
    %172 = arith.mulf %171, %171 : vector<8x32xf32>
    %cst_47 = arith.constant dense<0.000000e+00> : vector<8xf32>
    %173 = vector.multi_reduction <add>, %172, %cst_47 [1] : vector<8x32xf32> to vector<8xf32>
    %174 = vector.shape_cast %173 : vector<8xf32> to vector<8x1xf32>
    %cst_48 = arith.constant 3.200000e+01 : f32
    %175 = vector.broadcast %cst_48 : f32 to vector<8x1xf32>
    %176 = arith.divf %174, %175 : vector<8x1xf32>
    %177 = vector.broadcast %169 : vector<8x1xf32> to vector<8x32xf32>
    %178 = arith.subf %165, %177 : vector<8x32xf32>
    %cst_49 = arith.constant 9.99999974E-6 : f32
    %179 = vector.broadcast %cst_49 : f32 to vector<8x1xf32>
    %180 = arith.addf %176, %179 : vector<8x1xf32>
    %181 = math.rsqrt %180 : vector<8x1xf32>
    %182 = vector.broadcast %181 : vector<8x1xf32> to vector<8x32xf32>
    %183 = arith.mulf %178, %182 : vector<8x32xf32>
    %184 = vector.broadcast %109 : vector<1x32xf32> to vector<8x32xf32>
    %185 = arith.mulf %183, %184 : vector<8x32xf32>
    %186 = vector.broadcast %110 : vector<1x32xf32> to vector<8x32xf32>
    %187 = arith.addf %185, %186 : vector<8x32xf32>
    %c0_50 = arith.constant 0 : index
    %c0_51 = arith.constant 0 : index
    %188 = vector.load %arg9[%c0_50, %c0_51] : memref<8x32xf32, #tpu.memory_space<vmem>>, vector<8x32xf32>
    tpu.vector_store %arg9[%c0_50, %c0_51], %187 {strides = array<i32>} : memref<8x32xf32, #tpu.memory_space<vmem>>, vector<8x32xf32>,
    return
  }
  func.func @transform_0(%arg0: i32) -> (i32, i32) {
    %c0_i32 = arith.constant 0 : i32
    %c0_i32_0 = arith.constant 0 : i32
    return %arg0, %c0_i32 : i32, i32
  }
  func.func @transform_1(%arg0: i32) -> (i32, i32) {
    %c0_i32 = arith.constant 0 : i32
    %c0_i32_0 = arith.constant 0 : i32
    %c0_i32_1 = arith.constant 0 : i32
    return %c0_i32, %c0_i32_0 : i32, i32
  }
  func.func @transform_2(%arg0: i32) -> (i32, i32) {
    %c0_i32 = arith.constant 0 : i32
    %c0_i32_0 = arith.constant 0 : i32
    %c0_i32_1 = arith.constant 0 : i32
    return %c0_i32, %c0_i32_0 : i32, i32
  }
  func.func @transform_3(%arg0: i32) -> (i32, i32) {
    %c0_i32 = arith.constant 0 : i32
    %c0_i32_0 = arith.constant 0 : i32
    %c0_i32_1 = arith.constant 0 : i32
    return %c0_i32, %c0_i32_0 : i32, i32
  }
  func.func @transform_4(%arg0: i32) -> (i32, i32) {
    %c0_i32 = arith.constant 0 : i32
    %c0_i32_0 = arith.constant 0 : i32
    %c0_i32_1 = arith.constant 0 : i32
    return %c0_i32, %c0_i32_0 : i32, i32
  }
  func.func @transform_5(%arg0: i32) -> (i32, i32) {
    %c0_i32 = arith.constant 0 : i32
    %c0_i32_0 = arith.constant 0 : i32
    %c0_i32_1 = arith.constant 0 : i32
    return %c0_i32, %c0_i32_0 : i32, i32
  }
  func.func @transform_6(%arg0: i32) -> (i32, i32) {
    %c0_i32 = arith.constant 0 : i32
    %c0_i32_0 = arith.constant 0 : i32
    %c0_i32_1 = arith.constant 0 : i32
    return %c0_i32, %c0_i32_0 : i32, i32
  }
  func.func @transform_7(%arg0: i32) -> (i32, i32) {
    %c0_i32 = arith.constant 0 : i32
    %c0_i32_0 = arith.constant 0 : i32
    %c0_i32_1 = arith.constant 0 : i32
    return %c0_i32, %c0_i32_0 : i32, i32
  }
  func.func @transform_8(%arg0: i32) -> (i32, i32) {
    %c0_i32 = arith.constant 0 : i32
    %c0_i32_0 = arith.constant 0 : i32
    return %arg0, %c0_i32 : i32, i32
  }
}

</mosaic_0001>

<bundles_post_ra>
// kernel: tpu_custom_call.1
= control target key start
LH: loop header
LB: loop body
LE: loop exit
PB: predicated region body
PF: predicated region fallthrough
CT: control target
= control target key end

     0   :  { %13 = vsyncpa [#allocation3], 0  ;;  %s2294_s0 = inlined_call_operand.vmem [shape: f32[16,32], index: 0, kind: input, shape index: {}]   ;;  %s2295_s1 = inlined_call_operand.vmem [shape: bf16[32,96], index: 1, kind: input, shape index: {}]   ;;  %s2296_s2 = inlined_call_operand.vmem [shape: f32[1,96], index: 2, kind: input, shape index: {}]   ;;  %s2297_s3 = inlined_call_operand.vmem [shape: bf16[32,32], index: 3, kind: input, shape index: {}]   ;;  %s2298_s4 = inlined_call_operand.vmem [shape: bf16[32,512], index: 4, kind: input, shape index: {}]   ;;  %s2299_s5 = inlined_call_operand.vmem [shape: f32[1,512], index: 5, kind: input, shape index: {}]   ;;  %s2300_s6 = inlined_call_operand.vmem [shape: bf16[512,32], index: 6, kind: input, shape index: {}]   ;;  %s2301_s7 = inlined_call_operand.vmem [shape: f32[6,32], index: 7, kind: input, shape index: {}]   ;;  %s2302_s8 = inlined_call_operand.hbm [shape: f32[16,32], index: 8, kind: output, shape index: {}]  }
   0x1   :  { %15 = vsyncpa [#allocation3 + $0x1], 0  ;;  %s1865_s27 = smov 0   ;;  %s1867_s28 = smov 0  }
   0x2   :  { %s1869_s29 = smov 0   ;;  %s1871_s30 = smov 0  }
   0x3 LB: > { %s1886_s9 = sadd.s32 4294967295, %s1803_s30   ;;  %s1405_s10 = sadd.s32 4294967294, %s1803_s30   ;;  %s1803_s30 = sphi %s1871_s30, %s2308_s30   ;;  %s1799_s29 = sphi %s1869_s29, %s2307_s29   ;;  %s1795_s28 = sphi %s1867_s28, %s2306_s28   ;;  %s1791_s27 = sphi %s1865_s27, %s2305_s27  }
   0x4   : > { %s1890_s11 = sadd.s32 1, %s1803_s30   ;;  %s201_s12 = sadd.s32 1, %s1799_s29 }
   0x5   : > { %s198_s13 = ssub.s32 %s1803_s30, %s1890_s11  ;;  %p211_p0 = scmp.ne.s32.totalorder %s1799_s29, %s1795_s28 }
   0x6   : > { %p199_p1 = scmp.eq.s32.totalorder %s198_s13, 0  ;;  %p212_p2 = scmp.eq.s32.totalorder %s1886_s9, 1 }
   0x7   : > { %p217_p3 = scmp.ne.s32.totalorder %s1795_s28, %s1791_s27  ;;  %p218_p4 = scmp.eq.s32.totalorder %s1405_s10, 1 }
   0x8   : > { %s1901_s14 = scalar_select %p199_p1, %s1799_s29, %s201_s12  }
   0x9   : > { %p1903_p5 = por %p212_p2, %p211_p0  ;;  %p1907_p6 = por %p218_p4, %p217_p3 }
   0xa   : > { %p1408_p7 = scmp.ge.s32.totalorder %s1803_s30, 1  ;;  %p264_p8 = scmp.lt.s32.totalorder %s1803_s30, 3 }
   0xc   : > { %p265_p9 = pnand %p1408_p7, %p264_p8 }
   0xd   : > { %p297_p10 = scmp.lt.s32.totalorder (!%p265_p9), %s1886_s9, 1  ;;  %s1805_s12 = smov (!%p265_p9), 104  }
   0xe   : > { %268 = sbr.rel (%p265_p9) target bundleno = 2014 (0x7de), region = 52  ;;  %s1806_s13 = smov (!%p265_p9), 120  }
   0xf   : > { %s1807_s17 = smov (!%p265_p9), 96   ;;  %s1808_s18 = smov (!%p265_p9), 80  }
  0x10   : > { %s1809_s19 = smov (!%p265_p9), 72   ;;  %s1810_s20 = smov (!%p265_p9), 88  }
  0x11   : > { %s1813_s23 = smov (!%p265_p9), 40   ;;  %s1814_s24 = smov (!%p265_p9), 56  }
  0x12   : > { %s1816_s26 = smov (!%p265_p9), 8   ;;  %s1817_s10 = smov (!%p265_p9), 16  }
  0x13   : > { %v1611_v0 = vld [vmem:[%s2295_s1 + $0x8] sm:$0xff]  ;;  %v1610_v1 = vld [vmem:[%s2295_s1] sm:$0xff]  ;;  %s298_s21 = scalar_select %p297_p10, %s1886_s9, 1  ;;  %vm324_vm0 = vcmask 261120   ;;  %vm347_vm1 = vcmask 64512   ;;  %vm384_vm2 = vcmask 1043456  }
  0x14   : > { %334 = vmatpush.bf16.msra.mxu0 %v1611_v0  ;;  %v1708_v4 = vld [vmem:[%s2296_s2] ss:$0 sm:$0xff]  ;;  %vm582_vm3 = vcmask 130048   ;;  %vm584_vm4 = vcmask 195584  }
  0x15   : > { %s1410_s22 = sshll.u32 %s298_s21, 3  ;;  %s1811_s21 = smov 112  }
  0x16   : > { %s300_s25 = scalar_lea.vmem %s2294_s0, %s1410_s22  ;;  %s1812_s22 = smov 64  }
  0x17   : > { %v1924_v2 = vld [vmem:[%s300_s25] sm:$0xff]  ;;  %s1815_s25 = smov 48  }
  0x18   : > { %335 = vmatpush.bf16.msra.mxu0 %v1610_v1  ;;  %v303_v3 = vpack.c.bf16 %v1924_v2, %v1924_v2 }
  0x1b   : > { %1419 = vmatmul.msk.bf16.vlgmr.msra.gmra.mxu0 %vm324_vm0, %v303_v3 }
  0x98   : > { %v337_v5 = vpop.f32.mrf.mxu0 }
  0x99   : > { %v338_v6 = vadd.f32 %v1708_v4, %v337_v5 }
  0x9b   : > { %v341_v7 = vpack.c.bf16 %v338_v6, %v338_v6 }
  0x9d   : > { %v343_v8 = vunpack.c.l.b16 %v341_v7 }
  0x9f   : > { %v1932_v9 = vpack.c.b16 %v343_v8, %v343_v8 }
  0xa0   : > { %v339_v10 = vpop.f32.mrf.mxu0 }
  0xa1   : > { %513 = vrot.lane.b32.xlu2 %v1932_v9, %s1805_s12  ;;  %401 = vrot.lane.b32.xlu1 %v1932_v9, %s1806_s13  ;;  %s1818_s12 = smov 24   ;;  %s294_s13 = sand.u32 1, %s1795_s28  }
  0xa2   : > { %345 = vrot.lane.b32.xlu0 %v1932_v9, %s1807_s17  ;;  %s1409_s17 = sshll.u32 %s294_s13, 3 }
  0xa9   : > { %459 = vrot.lane.b32.xlu2 %v1932_v9, %s1808_s18  ;;  %515 = vrot.lane.b32.xlu1 %v1932_v9, %s1809_s19  ;;  %s1607_s18 = sshll.u32 %s1886_s9, 3  ;;  %s1331_s9 = scalar_lea.sflag [#allocation3], %s294_s13 }
  0xaa   : > { %403 = vrot.lane.b32.xlu0 %v1932_v9, %s1810_s20 }
  0xb2   : > { %457 = vrot.lane.b32.xlu0 %v1932_v9, %s1811_s21  ;;  %s1341_s21 = scalar_lea.hbm %s2302_s8, %s1607_s18 }
  0xfb   : > { %v514_v11 = vpop.permute.xlu2 %513 }
 0x103   : > { %v460_v12 = vpop.permute.xlu2 %459 }
 0x104   : > { %v465_v13 = vsel %vm347_vm1, %v460_v12, 0 }
 0x105   : > { %474 = vmatpush.bf16.xpose.msrb.mxu0 %v465_v13 }
 0x113   : > { %v402_v14 = vpop.permute.xlu1 %401 }
 0x114   : > { %v346_v15 = vpop.permute.xlu0 %345 }
 0x115   : > { %v352_v16 = vsel %vm347_vm1, %v346_v15, 0 }
 0x116   : > { %361 = vmatpush.bf16.xpose.msra.mxu1 %v352_v16 }
 0x11b   : > { %v516_v17 = vpop.permute.xlu1 %515 }
 0x11c   : > { %v404_v18 = vpop.permute.xlu0 %403  ;;  %v521_v19 = vsel %vm347_vm1, %v516_v17, 0 }
 0x11d   : > { %1420 = vmatmul.msk.bf16.vlgmr.msra.gmra.mxu1 %vm347_vm1, %v341_v7  ;;  %v409_v20 = vsel %vm347_vm1, %v404_v18, 0 }
 0x11e   : > { %418 = vmatpush.bf16.xpose.msra.mxu3 %v409_v20 }
 0x124   : > { %v458_v21 = vpop.permute.xlu0 %457 }
 0x125   : > { %1422 = vmatmul.msk.bf16.vlgmr.msra.gmra.mxu3 %vm347_vm1, %v402_v14  ;;  %1424 = vmatmul.msk.bf16.vlgmr.msrb.gmra.mxu0 %vm347_vm1, %v458_v21 }
 0x126   : > { %530 = vmatpush.bf16.xpose.msrb.mxu3 %v521_v19 }
 0x135   : > { %1426 = vmatmul.msk.bf16.vlgmr.msrb.gmra.mxu3 %vm347_vm1, %v514_v11 }
 0x19a   : > { %v363_v22 = vpop.f32.mrf.mxu1 }
 0x19b   : > { %v367_v23 = vsel %vm347_vm1, %v363_v22, -inf }
 0x19c   : > { %368 = vmax.xlane.f32.xlu1 %v367_v23  ;;  %v1613_v23 = vld [vmem:[%s2297_s3 + $0x8] sm:$0xff] }
 0x19d   : > { %614 = vmatpush.bf16.msra.mxu0 %v1613_v23 }
 0x1a2   : > { %v365_v24 = vpop.f32.mrf.mxu1  ;;  %v476_v25 = vpop.f32.mrf.mxu0 }
 0x1a3   : > { %v480_v30 = vsel %vm347_vm1, %v476_v25, -inf  ;;  %v1612_v24 = vld [vmem:[%s2297_s3] sm:$0xff] }
 0x1a4   : > { %615 = vmatpush.bf16.msra.mxu0 %v1612_v24 }
 0x1a8   : > { %v420_v26 = vpop.f32.mrf.mxu3 }
 0x1a9   : > { %v424_v27 = vsel %vm347_vm1, %v420_v26, -inf }
 0x1aa   : > { %425 = vmax.xlane.f32.xlu2 %v424_v27  ;;  %v478_v28 = vpop.f32.mrf.mxu0 }
 0x1b0   : > { %v422_v29 = vpop.f32.mrf.mxu3 }
 0x1b2   : > { %481 = vmax.xlane.f32.xlu2 %v480_v30 }
 0x1b8   : > { %v532_v31 = vpop.f32.mrf.mxu3 }
 0x1b9   : > { %v536_v32 = vsel %vm347_vm1, %v532_v31, -inf }
 0x1ba   : > { %537 = vmax.xlane.f32.xlu0 %v536_v32  ;;  %v1980_v32 = vld [vmem:[%s2301_s7] sm:$0x3f] }
 0x1c0   : > { %v534_v33 = vpop.f32.mrf.mxu3 }
 0x1c1   : > { %v592_v33 = vperm.slane %v1980_v32, 0 }
 0x1ca   : > { %379 = vrot.lane.b32.xlu2 %v1932_v9, %s1812_s22  ;;  %s296_s22 = scalar_lea.vmem [#allocation2], %s1409_s17  ;;  %s1761_s17 = scalar_lea.hbm %s2302_s8, 16 }
 0x1d2   : > { %548 = vrot.lane.b32.xlu2 %v1932_v9, %s1813_s23  ;;  %s1343_s23 = sshll.u32 %s296_s22, 4  ;;  %s1344_s23 = int_to_ptr.vmem [resolvable:$true] %s1343_s23 }
 0x20f   : > { %v369_v34 = vpop.xlane.xlu1 %368 }
 0x210   : > { %v370_v35 = vsub.f32 %v363_v22, %v369_v34 }
 0x212   : > { %v371_v36 = vmul.f32 1.442695, %v370_v35 }
 0x214   : > { %1709 = vpow2.f32 %v371_v36 }
 0x21a   : > { %v1710_v37 = vpop.eup %1709 }
 0x21b   : > { %v373_v38 = vsel %vm347_vm1, %v1710_v37, 0.0 }
 0x21c   : > { %374 = vadd.xlane.f32.xlu1 %v373_v38 }
 0x21d   : > { %v426_v39 = vpop.xlane.xlu2 %425 }
 0x21e   : > { %v427_v42 = vsub.f32 %v420_v26, %v426_v39  ;;  %v1819_v39 = vmov 32.0  }
 0x220   : > { %v428_v44 = vmul.f32 1.442695, %v427_v42 }
 0x225   : > { %v482_v40 = vpop.xlane.xlu2 %481 }
 0x226   : > { %v483_v41 = vsub.f32 %v476_v25, %v482_v40 }
 0x228   : > { %v484_v43 = vmul.f32 1.442695, %v483_v41 }
 0x22a   : > { %1711 = vpow2.f32 %v484_v43 }
 0x22b   : > { %1713 = vpow2.f32 %v428_v44 }
 0x22d   : > { %v380_v45 = vpop.permute.xlu2 %379  ;;  %v538_v46 = vpop.xlane.xlu0 %537 }
 0x22e   : > { %v386_v47 = vsel %vm384_vm2, %v380_v45, 0  ;;  %v539_v49 = vsub.f32 %v532_v31, %v538_v46 }
 0x22f   : > { %395 = vmatpush.bf16.msra.mxu2 %v386_v47 }
 0x230   : > { %v1712_v48 = vpop.eup %1711  ;;  %v540_v51 = vmul.f32 1.442695, %v539_v49 }
 0x231   : > { %v486_v50 = vsel %vm347_vm1, %v1712_v48, 0.0  ;;  %v1714_v52 = vpop.eup %1713 }
 0x232   : > { %487 = vadd.xlane.f32.xlu0 %v486_v50  ;;  %1715 = vpow2.f32 %v540_v51  ;;  %v430_v53 = vsel %vm347_vm1, %v1714_v52, 0.0  ;;  %v1618_v50 = vld [vmem:[%s2298_s4 + $0x24] sm:$0xf]  ;;  %v1457_v51 = vld [vmem:[%s2298_s4 + $0x30] sm:$0xf0] }
 0x235   : > { %436 = vrot.lane.b32.xlu1 %v1932_v9, %s1814_s24  ;;  %v549_v61 = vpop.permute.xlu2 %548  ;;  %s1345_s24 = sshll.u32 %s1341_s21, 4  ;;  %s1346_s24 = int_to_ptr.hbm [resolvable:$true] %s1345_s24 }
 0x236   : > { %v554_v0 = vsel %vm384_vm2, %v549_v61, 0 }
 0x238   : > { %v1716_v54 = vpop.eup %1715 }
 0x239   : > { %v542_v55 = vsel %vm347_vm1, %v1716_v54, 0.0 }
 0x23a   : > { %431 = vadd.xlane.f32.xlu0 %v430_v53  ;;  %v1460_v53 = vor.u32 %v1618_v50, %v1457_v51  ;;  %v1628_v50 = vld [vmem:[%s2300_s6 + $0x30] sm:$0xff] }
 0x23b   : > { %v1652_v51 = vld [vmem:[%s2300_s6 + $0xf0] sm:$0xff] }
 0x23c   : > { %736 = vmatpush.bf16.msra.mxu3 %v1460_v53 }
 0x242   : > { %543 = vadd.xlane.f32.xlu0 %v542_v55  ;;  %v1455_v55 = vld [vmem:[%s2298_s4 + $0x20] sm:$0xf] }
 0x256   : > { %492 = vrot.lane.b32.xlu0 %v1932_v9, %s1815_s25  ;;  %s1755_s25 = sshra.s32 %s1346_s24, 4  ;;  %s1756_s25 = int_to_ptr.hbm [resolvable:$true] %s1755_s25 }
 0x257   : > { %p1762_p0 = scmp.lt.s32.totalorder %s1756_s25, %s2302_s8 }
 0x28f   : > { %v375_v56 = vpop.xlane.xlu1 %374 }
 0x290   : > { %1717 = vrcp.f32 %v375_v56  ;;  %v1620_v56 = vld [vmem:[%s2298_s4 + $0x2c] sm:$0xf0] }
 0x296   : > { %v1718_v57 = vpop.eup %1717 }
 0x297   : > { %v377_v58 = vmul.f32 %v1718_v57, %v1710_v37 }
 0x299   : > { %v378_v59 = vpack.c.bf16 %v377_v58, %v377_v58  ;;  %v1456_v58 = vor.u32 %v1620_v56, %v1455_v55 }
 0x29b   : > { %1421 = vmatmul.msk.bf16.vlgmr.msra.gmra.mxu2 %vm347_vm1, %v378_v59  ;;  %v1619_v59 = vld [vmem:[%s2298_s4 + $0x2c] sm:$0xf] }
 0x2a5   : > { %v488_v60 = vpop.xlane.xlu0 %487 }
 0x2a7   : > { %v437_v62 = vpop.permute.xlu1 %436 }
 0x2a8   : > { %v442_v63 = vsel %vm384_vm2, %v437_v62, 0  ;;  %v1614_v62 = vld [vmem:[%s2298_s4 + $0x4] sm:$0xf] }
 0x2a9   : > { %451 = vmatpush.bf16.msrb.mxu2 %v442_v63  ;;  %v1441_v63 = vld [vmem:[%s2298_s4 + $0x10] sm:$0xf0] }
 0x2ad   : > { %563 = vmatpush.bf16.msra.mxu2 %v554_v0  ;;  %v432_v1 = vpop.xlane.xlu0 %431  ;;  %v1447_v0 = vld [vmem:[%s2298_s4 + $0x8] sm:$0xf] }
 0x2ae   : > { %1719 = vrcp.f32 %v432_v1  ;;  %v1444_v1 = vor.u32 %v1614_v62, %v1441_v63 }
 0x2b0   : > { %737 = vmatpush.bf16.msra.mxu3 %v1444_v1 }
 0x2b4   : > { %v1720_v3 = vpop.eup %1719 }
 0x2b5   : > { %v434_v4 = vmul.f32 %v1720_v3, %v1714_v52  ;;  %v544_v5 = vpop.xlane.xlu0 %543  ;;  %v1463_v52 = vld [vmem:[%s2298_s4 + $0x28] sm:$0xf]  ;;  %v1617_v3 = vld [vmem:[%s2298_s4 + $0x14] sm:$0xf0] }
 0x2b6   : > { %1721 = vrcp.f32 %v544_v5  ;;  %v1616_v5 = vld [vmem:[%s2298_s4 + $0xc] sm:$0xf0] }
 0x2b7   : > { %v435_v6 = vpack.c.bf16 %v434_v4, %v434_v4  ;;  %1723 = vrcp.f32 %v488_v60  ;;  %v1465_v60 = vld [vmem:[%s2298_s4 + $0x38] sm:$0xf0]  ;;  %v1439_v4 = vld [vmem:[%s2298_s4] sm:$0xf] }
 0x2b8   : > { %1725 = vrcp.f32 %v1819_v39  ;;  %v1468_v61 = vor.u32 %v1619_v59, %v1465_v60  ;;  %v1629_v39 = vld [vmem:[%s2300_s6 + $0x38] sm:$0xff] }
 0x2b9   : > { %1423 = vmatmul.msk.bf16.vlgmr.msrb.gmra.mxu2 %vm347_vm1, %v435_v6  ;;  %v1448_v6 = vor.u32 %v1617_v3, %v1447_v0  ;;  %v1637_v60 = vld [vmem:[%s2300_s6 + $0x78] sm:$0xff] }
 0x2ba   : > { %762 = vmatpush.bf16.msrb.mxu0 %v1468_v61  ;;  %1219 = vmatpush.bf16.msrb.mxu3 %v1637_v60 }
 0x2bc   : > { %v1722_v7 = vpop.eup %1721 }
 0x2bd   : > { %v546_v8 = vmul.f32 %v1722_v7, %v1716_v54  ;;  %v1724_v9 = vpop.eup %1723  ;;  %v1621_v54 = vld [vmem:[%s2298_s4 + $0x34] sm:$0xf0]  ;;  %v1440_v7 = vor.u32 %v1616_v5, %v1439_v4  ;;  %v1627_v5 = vld [vmem:[%s2300_s6 + $0x28] sm:$0xff] }
 0x2be   : > { %v490_v10 = vmul.f32 %v1724_v9, %v1712_v48  ;;  %v1726_v40 = vpop.eup %1725  ;;  %v1464_v57 = vor.u32 %v1621_v54, %v1463_v52  ;;  %v1449_v9 = vld [vmem:[%s2298_s4 + $0x18] sm:$0xf0] }
 0x2bf   : > { %v547_v11 = vpack.c.bf16 %v546_v8, %v546_v8  ;;  %v626_v41 = vmul.f32 32.0, %v1726_v40  ;;  %vm630_vm5 = vweird.f32 %v1726_v40  ;;  %v1615_v8 = vld [vmem:[%s2298_s4 + $0xc] sm:$0xf]  ;;  %v1645_v4 = vld [vmem:[%s2300_s6 + $0xb8] sm:$0xff] }
 0x2c0   : > { %v491_v14 = vpack.c.bf16 %v490_v10, %v490_v10  ;;  %749 = vmatpush.bf16.msrb.mxu2 %v1464_v57  ;;  %v1452_v10 = vor.u32 %v1615_v8, %v1449_v9 }
 0x2c1   : > { %v627_v42 = vsub.f32 1.0, %v626_v41 }
 0x2c2   : > { %763 = vmatpush.bf16.msrb.mxu0 %v1452_v10 }
 0x2c3   : > { %v628_v43 = vmul.f32 %v1726_v40, %v627_v42 }
 0x2c4   : > { %750 = vmatpush.bf16.msrb.mxu2 %v1448_v6  ;;  %v1651_v6 = vld [vmem:[%s2300_s6 + $0xe8] sm:$0xff] }
 0x2c5   : > { %v629_v44 = vadd.f32 %v1726_v40, %v628_v43 }
 0x2c7   : > { %v1985_v45 = vsel %vm630_vm5, %v1726_v40, %v629_v44  ;;  %v1653_v40 = vld [vmem:[%s2300_s6 + $0xf8] sm:$0xff] }
 0x2c8   : > { %v493_v12 = vpop.permute.xlu0 %492 }
 0x2c9   : > { %1427 = vmatmul.msk.bf16.vlgmr.msra.gmra.mxu2 %vm347_vm1, %v547_v11  ;;  %v498_v13 = vsel %vm384_vm2, %v493_v12, 0 }
 0x2ca   : > { %507 = vmatpush.bf16.msrb.mxu1 %v498_v13  ;;  %1232 = vmatpush.bf16.msra.mxu2 %v1645_v4 }
 0x2cd   : > { %1425 = vmatmul.msk.bf16.vlgmr.msrb.gmra.mxu1 %vm347_vm1, %v491_v14 }
 0x2ce   : > { %723 = vmatpush.bf16.msra.mxu1 %v1456_v58 }
 0x2d2   : > { %724 = vmatpush.bf16.msra.mxu1 %v1440_v7 }
 0x2d6   : > { %1206 = vmatpush.bf16.msrb.mxu1 %v1629_v39 }
 0x2da   : > { %1207 = vmatpush.bf16.msrb.mxu1 %v1628_v50 }
 0x2de   : > { %1208 = vmatpush.bf16.msrb.mxu1 %v1627_v5 }
 0x31e   : > { %v397_v15 = vpop.f32.mrf.mxu2 }
 0x326   : > { %v399_v16 = vpop.f32.mrf.mxu2 }
 0x33c   : > { %v453_v17 = vpop.f32.mrf.mxu2 }
 0x33d   : > { %570 = vrot.lane.b32.xlu1 %v453_v17, %s1816_s26  ;;  %s1757_s26 = scalar_lea.hbm %s1756_s25, 8 }
 0x33e   : > { %p1758_p11 = scmp.ne.s32.totalorder %s1756_s25, %s1757_s26  ;;  %p1763_p1 = scmp.lt.s32.totalorder %s1761_s17, %s1757_s26 }
 0x340   : > { %p1759_p12 = pnand %p1758_p11, %p1903_p5  ;;  %p1764_p2 = por %p1763_p1, %p1762_p0 }
 0x342   : > { %p1760_p13 = pneg %p1759_p12 }
 0x344   : > { %v455_v18 = vpop.f32.mrf.mxu2  ;;  %p1765_p3 = pnand %p1764_p2, %p1760_p13 }
 0x34a   : > { %v509_v19 = vpop.f32.mrf.mxu1 }
 0x34b   : > { %574 = vrot.lane.b32.xlu2 %v509_v19, %s1817_s10 }
 0x34c   : > { %v565_v20 = vpop.f32.mrf.mxu2 }
 0x34d   : > { %578 = vrot.lane.b32.xlu1 %v565_v20, %s1818_s12  ;;  %v651_v20 = vperm.slane %v1980_v32, 1 }
 0x352   : > { %v511_v21 = vpop.f32.mrf.mxu1 }
 0x354   : > { %v567_v22 = vpop.f32.mrf.mxu2 }
 0x355   : > { %v653_v22 = vperm.slane %v1980_v32, 2 }
 0x3a5   : > { %v575_v27 = vpop.permute.xlu2 %574 }
 0x3af   : > { %v571_v25 = vpop.permute.xlu1 %570 }
 0x3b0   : > { %v581_v26 = vsel %vm347_vm1, %v397_v15, %v571_v25 }
 0x3b1   : > { %v583_v29 = vsel %vm582_vm3, %v581_v26, %v575_v27  ;;  %v664_v27 = vld [vmem:[%s2299_s5] sm:$0xf] }
 0x3bf   : > { %v579_v28 = vpop.permute.xlu1 %578 }
 0x3c0   : > { %v585_v30 = vsel %vm584_vm4, %v583_v29, %v579_v28  ;;  %v666_v28 = vperm.slane %v664_v27, 0  ;;  %v669_v29 = vperm.slane %v664_v27, 3 }
 0x3c1   : > { %v586_v31 = vpack.c.bf16 %v585_v30, %v585_v30 }
 0x3c3   : > { %1436 = vmatmul.msk.bf16.vlgmr.msra.gmra.mxu0 %vm324_vm0, %v586_v31 }
 0x3c4   : > { %1245 = vmatpush.bf16.msra.mxu0 %v1653_v40 }
 0x3c8   : > { %1246 = vmatpush.bf16.msra.mxu0 %v1652_v51  ;;  %v1625_v51 = vld [vmem:[%s2300_s6 + $0x18] sm:$0xff] }
 0x3cc   : > { %1247 = vmatpush.bf16.msra.mxu0 %v1651_v6 }
 0x440   : > { %v617_v34 = vpop.f32.mrf.mxu0 }
 0x441   : > { %v618_v35 = vadd.f32 %v617_v34, %v592_v33 }
 0x443   : > { %v621_v36 = vadd.f32 %v618_v35, %v1924_v2 }
 0x445   : > { %v622_v37 = vsel %vm324_vm0, %v621_v36, 0.0 }
 0x446   : > { %623 = vadd.xlane.f32.xlu2 %v622_v37 }
 0x448   : > { %v619_v38 = vpop.f32.mrf.mxu0 }
 0x449   : > { %v668_v38 = vperm.slane %v664_v27, 2 }
 0x4b9   : > { %v624_v46 = vpop.xlane.xlu2 %623 }
 0x4ba   : > { %v632_v47 = vmul.f32 %v1985_v45, %v624_v46 }
 0x4bc   : > { %v633_v48 = vsub.f32 %v621_v36, %v632_v47  ;;  %v667_v36 = vperm.slane %v664_v27, 1 }
 0x4be   : > { %v634_v49 = vmul.f32 %v633_v48, %v633_v48 }
 0x4c0   : > { %v635_v2 = vsel %vm324_vm0, %v634_v49, 0.0 }
 0x4c1   : > { %636 = vadd.xlane.f32.xlu1 %v635_v2 }
 0x534   : > { %v637_v11 = vpop.xlane.xlu1 %636 }
 0x535   : > { %v638_v12 = vmul.f32 %v637_v11, %v1985_v45 }
 0x537   : > { %v639_v13 = vadd.f32 1e-05, %v638_v12  ;;  %v1636_v12 = vld [vmem:[%s2300_s6 + $0x70] sm:$0xff] }
 0x538   : > { %1220 = vmatpush.bf16.msrb.mxu3 %v1636_v12  ;;  %v1641_v12 = vld [vmem:[%s2300_s6 + $0x98] sm:$0xff] }
 0x539   : > { %1727 = vrsqrt.f32 %v639_v13  ;;  %vm646_vm7 = vweird.f32 %v639_v13 }
 0x53f   : > { %v1728_v14 = vpop.eup %1727 }
 0x540   : > { %v641_v15 = vmul.f32 %v1728_v14, %v639_v13  ;;  %vm647_vm6 = vweird.f32 %v1728_v14 }
 0x541   : > { %vm648_vm8 = vmor %vm646_vm7, %vm647_vm6 }
 0x542   : > { %v642_v16 = vmul.f32 %v1728_v14, %v641_v15 }
 0x544   : > { %v643_v17 = vmul.f32 0.5, %v642_v16  ;;  %v1644_v16 = vld [vmem:[%s2300_s6 + $0xb0] sm:$0xff] }
 0x545   : > { %1233 = vmatpush.bf16.msra.mxu2 %v1644_v16  ;;  %v1623_v16 = vld [vmem:[%s2300_s6 + $0x8] sm:$0xff] }
 0x546   : > { %v644_v18 = vsub.f32 1.5, %v643_v17 }
 0x548   : > { %v645_v19 = vmul.f32 %v1728_v14, %v644_v18 }
 0x54a   : > { %v649_v21 = vsel %vm648_vm8, %v1728_v14, %v645_v19 }
 0x54b   : > { %v650_v23 = vmul.f32 %v649_v21, %v633_v48 }
 0x54d   : > { %v652_v24 = vmul.f32 %v651_v20, %v650_v23 }
 0x54f   : > { %v2040_v25 = vadd.f32 %v653_v22, %v652_v24  ;;  %v1626_v24 = vld [vmem:[%s2300_s6 + $0x20] sm:$0xff] }
 0x550   : > { %1209 = vmatpush.bf16.msrb.mxu1 %v1626_v24  ;;  %v1640_v24 = vld [vmem:[%s2300_s6 + $0x90] sm:$0xff] }
 0x551   : > { %v655_v26 = vpack.c.bf16 %v2040_v25, %v2040_v25 }
 0x553   : > { %1469 = vmatmul.msk.bf16.vlgmr.msra.gmra.mxu1 %vm324_vm0, %v655_v26  ;;  %1470 = vmatmul.msk.bf16.vlgmr.msra.gmra.mxu3 %vm324_vm0, %v655_v26 }
 0x554   : > { %1471 = vmatmul.msk.bf16.vlgmr.msrb.gmra.mxu2 %vm324_vm0, %v655_v26  ;;  %1472 = vmatmul.msk.bf16.vlgmr.msrb.gmra.mxu0 %vm324_vm0, %v655_v26  ;;  %v1650_v26 = vld [vmem:[%s2300_s6 + $0xe0] sm:$0xff] }
 0x555   : > { %1248 = vmatpush.bf16.msra.mxu0 %v1650_v26  ;;  %1210 = vmatpush.bf16.msrb.mxu1 %v1625_v51 }
 0x5d0   : > { %v726_v30 = vpop.f32.mrf.mxu1 }
 0x5d1   : > { %v2051_v31 = vadd.f32 %v726_v30, %v666_v28  ;;  %v765_v33 = vpop.f32.mrf.mxu0  ;;  %v1635_v30 = vld [vmem:[%s2300_s6 + $0x68] sm:$0xff] }
 0x5d2   : > { %v2053_v34 = vadd.f32 %v765_v33, %v669_v29  ;;  %v1643_v33 = vld [vmem:[%s2300_s6 + $0xa8] sm:$0xff]  ;;  %1221 = vmatpush.bf16.msrb.mxu3 %v1635_v30 }
 0x5d3   : > { %v2056_v35 = vmul.f32 0.70710677, %v2051_v31  ;;  %1234 = vmatpush.bf16.msra.mxu2 %v1643_v33  ;;  %v1646_v33 = vld [vmem:[%s2300_s6 + $0xc0] sm:$0xff] }
 0x5d4   : > { %v2059_v37 = vmul.f32 0.70710677, %v2053_v34 }
 0x5d5   : > { %v777_v41 = vmul.f32 %v2056_v35, %v2056_v35 }
 0x5d6   : > { %v897_v42 = vmul.f32 %v2059_v37, %v2059_v37  ;;  %v739_v43 = vpop.f32.mrf.mxu3 }
 0x5d7   : > { %v2071_v44 = vmin.f32 %v777_v41, 16.0  ;;  %v2073_v46 = vadd.f32 %v739_v43, %v667_v36  ;;  %v752_v47 = vpop.f32.mrf.mxu2 }
 0x5d8   : > { %v2075_v48 = vmin.f32 %v897_v42, 16.0  ;;  %v2077_v49 = vadd.f32 %v752_v47, %v668_v38  ;;  %v728_v2 = vpop.f32.mrf.mxu1 }
 0x5d9   : > { %v779_v52 = vmul.f32 2.1237322e-06, %v2071_v44  ;;  %v790_v53 = vmul.f32 3.8918573e-05, %v2071_v44  ;;  %v767_v54 = vpop.f32.mrf.mxu0  ;;  %v2090_v57 = vmul.f32 0.70710677, %v2073_v46 }
 0x5da   : > { %v899_v55 = vmul.f32 2.1237322e-06, %v2075_v48  ;;  %v910_v56 = vmul.f32 3.8918573e-05, %v2075_v48  ;;  %v2098_v0 = vmul.f32 0.70710677, %v2077_v49 }
 0x5db   : > { %v780_v58 = vadd.f32 0.00028619796, %v779_v52  ;;  %v791_v59 = vadd.f32 0.001143296, %v790_v53  ;;  %v817_v63 = vmul.f32 %v2090_v57, %v2090_v57  ;;  %v1649_v52 = vld [vmem:[%s2300_s6 + $0xd8] sm:$0xff] }
 0x5dc   : > { %v900_v61 = vadd.f32 0.00028619796, %v899_v55  ;;  %v911_v62 = vadd.f32 0.001143296, %v910_v56  ;;  %v857_v10 = vmul.f32 %v2098_v0, %v2098_v0  ;;  %v1634_v55 = vld [vmem:[%s2300_s6 + $0x60] sm:$0xff]  ;;  %1249 = vmatpush.bf16.msra.mxu0 %v1649_v52 }
 0x5dd   : > { %v781_v1 = vmul.f32 %v780_v58, %v2071_v44  ;;  %v792_v3 = vmul.f32 %v791_v59, %v2071_v44  ;;  %v2113_v9 = vmin.f32 %v817_v63, 16.0  ;;  %v1642_v59 = vld [vmem:[%s2300_s6 + $0xa0] sm:$0xff]  ;;  %v1624_v63 = vld [vmem:[%s2300_s6 + $0x10] sm:$0xff]  ;;  %1222 = vmatpush.bf16.msrb.mxu3 %v1634_v55 }
 0x5de   : > { %v901_v7 = vmul.f32 %v900_v61, %v2075_v48  ;;  %v912_v8 = vmul.f32 %v911_v62, %v2075_v48  ;;  %v741_v11 = vpop.f32.mrf.mxu3  ;;  %v2127_v23 = vmin.f32 %v857_v10, 16.0  ;;  %v1633_v10 = vld [vmem:[%s2300_s6 + $0x58] sm:$0xff]  ;;  %1235 = vmatpush.bf16.msra.mxu2 %v1642_v59  ;;  %1211 = vmatpush.bf16.msrb.mxu1 %v1624_v63 }
 0x5df   : > { %v782_v13 = vadd.f32 0.0036580483, %v781_v1  ;;  %v793_v14 = vadd.f32 0.014752088, %v792_v3  ;;  %v754_v15 = vpop.f32.mrf.mxu2  ;;  %v819_v19 = vmul.f32 2.1237322e-06, %v2113_v9 }
 0x5e0   : > { %v902_v17 = vadd.f32 0.0036580483, %v901_v7  ;;  %v913_v18 = vadd.f32 0.014752088, %v912_v8  ;;  %v830_v22 = vmul.f32 3.8918573e-05, %v2113_v9 }
 0x5e1   : > { %v783_v20 = vmul.f32 %v782_v13, %v2071_v44  ;;  %v794_v21 = vmul.f32 %v793_v14, %v2071_v44  ;;  %v820_v29 = vadd.f32 0.00028619796, %v819_v19  ;;  %v859_v2 = vmul.f32 2.1237322e-06, %v2127_v23  ;;  %v1648_v1 = vld [vmem:[%s2300_s6 + $0xd0] sm:$0xff]  ;;  %1223 = vmatpush.bf16.msrb.mxu3 %v1633_v10 }
 0x5e2   : > { %v903_v27 = vmul.f32 %v902_v17, %v2075_v48  ;;  %v914_v28 = vmul.f32 %v913_v18, %v2075_v48  ;;  %v831_v39 = vadd.f32 0.001143296, %v830_v22  ;;  %v870_v50 = vmul.f32 3.8918573e-05, %v2127_v23  ;;  %1250 = vmatpush.bf16.msra.mxu0 %v1648_v1  ;;  %v1647_v17 = vld [vmem:[%s2300_s6 + $0xc8] sm:$0xff]  ;;  %v1632_v22 = vld [vmem:[%s2300_s6 + $0x50] sm:$0xff]  ;;  %1236 = vmatpush.bf16.msra.mxu2 %v1641_v12 }
 0x5e3   : > { %v784_v36 = vadd.f32 0.05243302, %v783_v20  ;;  %v795_v38 = vadd.f32 0.112945676, %v794_v21  ;;  %v821_v42 = vmul.f32 %v820_v29, %v2113_v9  ;;  %v860_v5 = vadd.f32 0.00028619796, %v859_v2  ;;  %1212 = vmatpush.bf16.msrb.mxu1 %v1623_v16 }
 0x5e4   : > { %v904_v40 = vadd.f32 0.05243302, %v903_v27  ;;  %v915_v41 = vadd.f32 0.112945676, %v914_v28  ;;  %v832_v47 = vmul.f32 %v831_v39, %v2113_v9  ;;  %v871_v6 = vadd.f32 0.001143296, %v870_v50 }
 0x5e5   : > { %v796_v43 = vmul.f32 %v795_v38, %v2071_v44  ;;  %v785_v53 = vmul.f32 %v784_v36, %v2071_v44  ;;  %v822_v62 = vadd.f32 0.0036580483, %v821_v42  ;;  %v861_v20 = vmul.f32 %v860_v5, %v2127_v23  ;;  %1224 = vmatpush.bf16.msrb.mxu3 %v1632_v22 }
 0x5e6   : > { %v916_v54 = vmul.f32 %v915_v41, %v2075_v48  ;;  %v833_v58 = vadd.f32 0.014752088, %v832_v47  ;;  %v905_v60 = vmul.f32 %v904_v40, %v2075_v48  ;;  %v872_v15 = vmul.f32 %v871_v6, %v2127_v23  ;;  %1251 = vmatpush.bf16.msra.mxu0 %v1647_v17  ;;  %v1631_v40 = vld [vmem:[%s2300_s6 + $0x48] sm:$0xff]  ;;  %1237 = vmatpush.bf16.msra.mxu2 %v1640_v24 }
 0x5e7   : > { %v797_v56 = vadd.f32 0.4994258, %v796_v43  ;;  %v786_v7 = vadd.f32 0.18741608, %v785_v53  ;;  %v823_v19 = vmul.f32 %v822_v62, %v2113_v9  ;;  %v862_v30 = vadd.f32 0.0036580483, %v861_v20 }
 0x5e8   : > { %v917_v61 = vadd.f32 0.4994258, %v916_v54  ;;  %v834_v4 = vmul.f32 %v833_v58, %v2113_v9  ;;  %v906_v18 = vadd.f32 0.18741608, %v905_v60  ;;  %v873_v27 = vadd.f32 0.014752088, %v872_v15 }
 0x5e9   : > { %v798_v3 = vmul.f32 %v797_v56, %v2071_v44  ;;  %v787_v21 = vmul.f32 %v786_v7, %v2071_v44  ;;  %v1622_v44 = vld [vmem:[%s2300_s6] sm:$0xff]  ;;  %v824_v29 = vadd.f32 0.05243302, %v823_v19  ;;  %1225 = vmatpush.bf16.msrb.mxu3 %v1631_v40  ;;  %v863_v56 = vmul.f32 %v862_v30, %v2127_v23 }
 0x5ea   : > { %v918_v8 = vmul.f32 %v917_v61, %v2075_v48  ;;  %v835_v14 = vadd.f32 0.112945676, %v834_v4  ;;  %v907_v28 = vmul.f32 %v906_v18, %v2075_v48  ;;  %v874_v39 = vmul.f32 %v873_v27, %v2127_v23  ;;  %1213 = vmatpush.bf16.msrb.mxu1 %v1622_v44  ;;  %v1639_v48 = vld [vmem:[%s2300_s6 + $0x88] sm:$0xff]  ;;  %1252 = vmatpush.bf16.msra.mxu0 %v1646_v33  ;;  %v1630_v58 = vld [vmem:[%s2300_s6 + $0x40] sm:$0xff] }
 0x5eb   : > { %v2175_v11 = vadd.f32 1.0, %v798_v3  ;;  %v788_v36 = vadd.f32 1.1283791, %v787_v21  ;;  %v825_v51 = vmul.f32 %v824_v29, %v2113_v9  ;;  %1238 = vmatpush.bf16.msra.mxu2 %v1639_v48 }
 0x5ec   : > { %v2180_v13 = vadd.f32 1.0, %v918_v8  ;;  %v836_v26 = vmul.f32 %v835_v14, %v2113_v9  ;;  %v908_v2 = vadd.f32 1.1283791, %v907_v28  ;;  %v875_v52 = vadd.f32 0.112945676, %v874_v39 }
 0x5ed   : > { %1729 = vrcp.f32 %v2175_v11  ;;  %v789_v53 = vmul.f32 %v788_v36, %v2056_v35  ;;  %v809_v59 = vand.u32 2147483647, %v2175_v11  ;;  %v811_v60 = vand.u32 2147483648, %v2175_v11  ;;  %v1638_v35 = vld [vmem:[%s2300_s6 + $0x80] sm:$0xff]  ;;  %1226 = vmatpush.bf16.msrb.mxu3 %v1630_v58 }
 0x5ee   : > { %1731 = vrcp.f32 %v2180_v13  ;;  %v837_v38 = vadd.f32 0.4994258, %v836_v26  ;;  %v876_v62 = vmul.f32 %v875_v52, %v2127_v23  ;;  %v931_v1 = vand.u32 2147483648, %v2180_v13 }
 0x5ef   : > { %v929_v4 = vand.u32 2147483647, %v2180_v13  ;;  %vm805_vm11 = vweird.f32 %v2175_v11  ;;  %v826_v7 = vadd.f32 0.18741608, %v825_v51  ;;  %v864_v8 = vadd.f32 0.05243302, %v863_v56  ;;  %1239 = vmatpush.bf16.msra.mxu2 %v1638_v35 }
 0x5f0   : > { %v838_v47 = vmul.f32 %v837_v38, %v2113_v9  ;;  %v877_v5 = vadd.f32 0.4994258, %v876_v62  ;;  %v812_v10 = vor.u32 1.1754944e-38, %v811_v60  ;;  %vm925_vm13 = vweird.f32 %v2180_v13 }
 0x5f1   : > { %vm810_vm14 = vcmp.eq.f32.partialorder %v809_v59, 8.507059e+37  ;;  %v909_v16 = vmul.f32 %v908_v2, %v2059_v37  ;;  %v932_v17 = vor.u32 1.1754944e-38, %v931_v1  ;;  %vm930_vm1 = vcmp.eq.f32.partialorder %v929_v4, 8.507059e+37 }
 0x5f2   : > { %v2220_v55 = vadd.f32 1.0, %v838_v47  ;;  %v878_v14 = vmul.f32 %v877_v5, %v2127_v23  ;;  %v827_v24 = vmul.f32 %v826_v7, %v2113_v9  ;;  %v769_v37 = vmul.f32 0.5, %v2051_v31 }
 0x5f3   : > { %v1730_v41 = vpop.eup %1729  ;;  %v772_v28 = vmul.f32 0.5, %v2053_v34 }
 0x5f4   : > { %v1732_v42 = vpop.eup %1731  ;;  %v801_v43 = vmul.f32 %v1730_v41, %v2175_v11  ;;  %vm806_vm9 = vweird.f32 %v1730_v41  ;;  %1733 = vrcp.f32 %v2220_v55  ;;  %v879_v11 = vadd.f32 1.0, %v878_v14 }
 0x5f5   : > { %v921_v50 = vmul.f32 %v1732_v42, %v2180_v13  ;;  %vm926_vm10 = vweird.f32 %v1732_v42  ;;  %vm807_vm12 = vmor %vm805_vm11, %vm806_vm9  ;;  %v865_v13 = vmul.f32 %v864_v8, %v2127_v23  ;;  %v828_v36 = vadd.f32 1.1283791, %v827_v24 }
 0x5f6   : > { %v802_v54 = vsub.f32 1.0, %v801_v43  ;;  %vm927_vm15 = vmor %vm925_vm13, %vm926_vm10  ;;  %1735 = vrcp.f32 %v879_v11  ;;  %v851_v38 = vand.u32 2147483648, %v2220_v55  ;;  %vm845_vm3 = vweird.f32 %v2220_v55 }
 0x5f7   : > { %v922_v61 = vsub.f32 1.0, %v921_v50  ;;  %v866_v39 = vadd.f32 0.18741608, %v865_v13  ;;  %v829_v52 = vmul.f32 %v828_v36, %v2090_v57  ;;  %v891_v59 = vand.u32 2147483648, %v879_v11 }
 0x5f8   : > { %v803_v63 = vmul.f32 %v1730_v41, %v802_v54  ;;  %v852_v34 = vor.u32 1.1754944e-38, %v851_v38  ;;  %vm885_vm7 = vweird.f32 %v879_v11 }
 0x5f9   : > { %v923_v3 = vmul.f32 %v1732_v42, %v922_v61  ;;  %v867_v2 = vmul.f32 %v866_v39, %v2127_v23  ;;  %v770_v23 = vmul.f32 0.5, %v2073_v46  ;;  %v892_v57 = vor.u32 1.1754944e-38, %v891_v59 }
 0x5fa   : > { %v804_v6 = vadd.f32 %v1730_v41, %v803_v63  ;;  %v1734_v20 = vpop.eup %1733 }
 0x5fb   : > { %v924_v12 = vadd.f32 %v1732_v42, %v923_v3  ;;  %v841_v27 = vmul.f32 %v1734_v20, %v2220_v55  ;;  %vm846_vm2 = vweird.f32 %v1734_v20  ;;  %v868_v60 = vadd.f32 1.1283791, %v867_v2 }
 0x5fc   : > { %v808_v15 = vsel %vm807_vm12, %v1730_v41, %v804_v6  ;;  %v849_v41 = vand.u32 2147483647, %v2220_v55  ;;  %vm847_vm4 = vmor %vm845_vm3, %vm846_vm2  ;;  %v889_v55 = vand.u32 2147483647, %v879_v11 }
 0x5fd   : > { %v813_v18 = vsel %vm810_vm14, %v812_v10, %v808_v15  ;;  %v928_v19 = vsel %vm927_vm15, %v1732_v42, %v924_v12  ;;  %v842_v30 = vsub.f32 1.0, %v841_v27  ;;  %v1736_v42 = vpop.eup %1735  ;;  %v869_v1 = vmul.f32 %v868_v60, %v2098_v0 }
 0x5fe   : > { %v814_v21 = vmul.f32 %v813_v18, %v789_v53  ;;  %v933_v22 = vsel %vm930_vm1, %v932_v17, %v928_v19  ;;  %v881_v50 = vmul.f32 %v1736_v42, %v879_v11  ;;  %vm850_vm5 = vcmp.eq.f32.partialorder %v849_v41, 8.507059e+37 }
 0x5ff   : > { %v934_v26 = vmul.f32 %v933_v22, %v909_v16  ;;  %v843_v9 = vmul.f32 %v1734_v20, %v842_v30  ;;  %vm886_vm6 = vweird.f32 %v1736_v42  ;;  %vm890_vm9 = vcmp.eq.f32.partialorder %v889_v55, 8.507059e+37 }
 0x600   : > { %v1473_v44 = vclamps-f32 %v814_v21, 1.0  ;;  %v882_v56 = vsub.f32 1.0, %v881_v50  ;;  %vm887_vm8 = vmor %vm885_vm7, %vm886_vm6  ;;  %v771_v10 = vmul.f32 0.5, %v2077_v49  ;;  %v1013_v0 = vperm.slane %v1980_v32, 3 }
 0x601   : > { %v1476_v29 = vclamps-f32 %v934_v26, 1.0  ;;  %v844_v47 = vadd.f32 %v1734_v20, %v843_v9 }
 0x602   : > { %v937_v33 = vadd.f32 1.0, %v1473_v44  ;;  %v883_v61 = vmul.f32 %v1736_v42, %v882_v56 }
 0x603   : > { %v940_v40 = vadd.f32 1.0, %v1476_v29  ;;  %v848_v53 = vsel %vm847_vm4, %v1734_v20, %v844_v47 }
 0x604   : > { %v941_v48 = vmul.f32 %v937_v33, %v769_v37  ;;  %v853_v54 = vsel %vm850_vm5, %v852_v34, %v848_v53  ;;  %v884_v35 = vadd.f32 %v1736_v42, %v883_v61 }
 0x605   : > { %v944_v43 = vmul.f32 %v940_v40, %v772_v28  ;;  %v854_v58 = vmul.f32 %v853_v54, %v829_v52 }
 0x606   : > { %v945_v31 = vpack.c.bf16 %v941_v48, %v941_v48  ;;  %v888_v3 = vsel %vm887_vm8, %v1736_v42, %v884_v35 }
 0x607   : > { %v948_v51 = vpack.c.bf16 %v944_v43, %v944_v43  ;;  %v1474_v62 = vclamps-f32 %v854_v58, 1.0  ;;  %v893_v5 = vsel %vm890_vm9, %v892_v57, %v888_v3 }
 0x608   : > { %1214 = vmatmul.bf16.vlgmr.msrb.gmra.mxu1 %v945_v31  ;;  %v894_v6 = vmul.f32 %v893_v5, %v869_v1 }
 0x609   : > { %1253 = vmatmul.bf16.vlgmr.msra.gmra.mxu0 %v948_v51  ;;  %v938_v63 = vadd.f32 1.0, %v1474_v62 }
 0x60a   : > { %v1475_v8 = vclamps-f32 %v894_v6, 1.0 }
 0x60b   : > { %v942_v4 = vmul.f32 %v938_v63, %v770_v23 }
 0x60c   : > { %v939_v12 = vadd.f32 1.0, %v1475_v8 }
 0x60d   : > { %v946_v7 = vpack.c.bf16 %v942_v4, %v942_v4 }
 0x60e   : > { %v943_v14 = vmul.f32 %v939_v12, %v771_v10 }
 0x60f   : > { %1227 = vmatmul.bf16.vlgmr.msrb.gmra.mxu3 %v946_v7 }
 0x610   : > { %v947_v15 = vpack.c.bf16 %v943_v14, %v943_v14 }
 0x612   : > { %1240 = vmatmul.bf16.vlgmr.msra.gmra.mxu2 %v947_v15 }
 0x685   : > { %v1215_v46 = vpop.f32.mrf.mxu1 }
 0x686   : > { %v1254_v16 = vpop.f32.mrf.mxu0  ;;  %v1216_v11 = vadd.f32 %v1215_v46, %v1013_v0 }
 0x68d   : > { %v1217_v17 = vpop.f32.mrf.mxu1 }
 0x68e   : > { %v1256_v18 = vpop.f32.mrf.mxu0 }
 0x692   : > { %v1228_v19 = vpop.f32.mrf.mxu3 }
 0x693   : > { %v1229_v20 = vadd.f32 %v1228_v19, %v1216_v11  ;;  %v1325_v11 = vperm.slane %v1980_v32, 4 }
 0x695   : > { %v1241_v21 = vpop.f32.mrf.mxu2 }
 0x696   : > { %v1242_v22 = vadd.f32 %v1241_v21, %v1229_v20  ;;  %v1327_v21 = vperm.slane %v1980_v32, 5 }
 0x698   : > { %v1255_v13 = vadd.f32 %v1254_v16, %v1242_v22 }
 0x69a   : > { %v1230_v24 = vpop.f32.mrf.mxu3  ;;  %v1259_v26 = vmul.f32 0.70710677, %v1255_v13  ;;  %v1258_v57 = vmul.f32 0.5, %v1255_v13 }
 0x69c   : > { %v1260_v27 = vmul.f32 %v1259_v26, %v1259_v26 }
 0x69d   : > { %v1243_v49 = vpop.f32.mrf.mxu2 }
 0x69e   : > { %v1261_v44 = vmin.f32 %v1260_v27, 16.0 }
 0x6a0   : > { %v1262_v37 = vmul.f32 2.1237322e-06, %v1261_v44  ;;  %v1273_v28 = vmul.f32 3.8918573e-05, %v1261_v44 }
 0x6a2   : > { %v1263_v29 = vadd.f32 0.00028619796, %v1262_v37  ;;  %v1274_v30 = vadd.f32 0.001143296, %v1273_v28 }
 0x6a4   : > { %v1264_v33 = vmul.f32 %v1263_v29, %v1261_v44  ;;  %v1275_v36 = vmul.f32 %v1274_v30, %v1261_v44 }
 0x6a6   : > { %v1276_v38 = vadd.f32 0.014752088, %v1275_v36  ;;  %v1265_v39 = vadd.f32 0.0036580483, %v1264_v33 }
 0x6a8   : > { %v1277_v40 = vmul.f32 %v1276_v38, %v1261_v44  ;;  %v1266_v41 = vmul.f32 %v1265_v39, %v1261_v44 }
 0x6aa   : > { %v1278_v9 = vadd.f32 0.112945676, %v1277_v40  ;;  %v1267_v43 = vadd.f32 0.05243302, %v1266_v41 }
 0x6ac   : > { %v1279_v48 = vmul.f32 %v1278_v9, %v1261_v44  ;;  %v1268_v34 = vmul.f32 %v1267_v43, %v1261_v44 }
 0x6ae   : > { %v1280_v42 = vadd.f32 0.4994258, %v1279_v48  ;;  %v1269_v2 = vadd.f32 0.18741608, %v1268_v34 }
 0x6b0   : > { %v1281_v47 = vmul.f32 %v1280_v42, %v1261_v44  ;;  %v1270_v51 = vmul.f32 %v1269_v2, %v1261_v44 }
 0x6b2   : > { %v1282_v31 = vadd.f32 1.0, %v1281_v47  ;;  %v1271_v56 = vadd.f32 1.1283791, %v1270_v51 }
 0x6b4   : > { %1737 = vrcp.f32 %v1282_v31  ;;  %v1294_v54 = vand.u32 2147483648, %v1282_v31  ;;  %v1292_v59 = vand.u32 2147483647, %v1282_v31  ;;  %vm1288_vm11 = vweird.f32 %v1282_v31 }
 0x6b5   : > { %v1272_v55 = vmul.f32 %v1271_v56, %v1259_v26 }
 0x6b6   : > { %v1295_v61 = vor.u32 1.1754944e-38, %v1294_v54  ;;  %vm1293_vm13 = vcmp.eq.f32.partialorder %v1292_v59, 8.507059e+37 }
 0x6ba   : > { %v1738_v50 = vpop.eup %1737 }
 0x6bb   : > { %v1284_v52 = vmul.f32 %v1738_v50, %v1282_v31  ;;  %vm1289_vm10 = vweird.f32 %v1738_v50 }
 0x6bc   : > { %vm1290_vm12 = vmor %vm1288_vm11, %vm1289_vm10 }
 0x6bd   : > { %v1285_v53 = vsub.f32 1.0, %v1284_v52 }
 0x6bf   : > { %v1286_v58 = vmul.f32 %v1738_v50, %v1285_v53 }
 0x6c1   : > { %v1287_v60 = vadd.f32 %v1738_v50, %v1286_v58 }
 0x6c3   : > { %v1291_v62 = vsel %vm1290_vm12, %v1738_v50, %v1287_v60 }
 0x6c4   : > { %v1296_v35 = vsel %vm1293_vm13, %v1295_v61, %v1291_v62 }
 0x6c5   : > { %v1297_v23 = vmul.f32 %v1296_v35, %v1272_v55 }
 0x6c7   : > { %v1605_v63 = vclamps-f32 %v1297_v23, 1.0 }
 0x6c9   : > { %v1300_v1 = vadd.f32 1.0, %v1605_v63 }
 0x6cb   : > { %v1301_v3 = vmul.f32 %v1300_v1, %v1258_v57 }
 0x6cd   : > { %v1302_v4 = vadd.f32 %v1301_v3, %v2040_v25 }
 0x6cf   : > { %v1303_v5 = vsel %vm324_vm0, %v1302_v4, 0.0 }
 0x6d0   : > { %1304 = vadd.xlane.f32.xlu0 %v1303_v5 }
 0x743   : > { %v1305_v6 = vpop.xlane.xlu0 %1304 }
 0x744   : > { %v1306_v7 = vmul.f32 %v1305_v6, %v1985_v45 }
 0x746   : > { %v1307_v8 = vsub.f32 %v1302_v4, %v1306_v7 }
 0x748   : > { %v1308_v10 = vmul.f32 %v1307_v8, %v1307_v8 }
 0x74a   : > { %v1309_v12 = vsel %vm324_vm0, %v1308_v10, 0.0 }
 0x74b   : > { %1310 = vadd.xlane.f32.xlu2 %v1309_v12 }
 0x7be   : > { %v1311_v14 = vpop.xlane.xlu2 %1310 }
 0x7bf   : > { %v1312_v15 = vmul.f32 %v1311_v14, %v1985_v45 }
 0x7c1   : > { %v1313_v46 = vadd.f32 1e-05, %v1312_v15 }
 0x7c3   : > { %1739 = vrsqrt.f32 %v1313_v46  ;;  %vm1320_vm15 = vweird.f32 %v1313_v46 }
 0x7c9   : > { %v1740_v16 = vpop.eup %1739 }
 0x7ca   : > { %v1315_v25 = vmul.f32 %v1740_v16, %v1313_v46  ;;  %vm1321_vm14 = vweird.f32 %v1740_v16 }
 0x7cb   : > { %vm1322_vm1 = vmor %vm1320_vm15, %vm1321_vm14 }
 0x7cc   : > { %v1316_v17 = vmul.f32 %v1740_v16, %v1315_v25 }
 0x7ce   : > { %v1317_v18 = vmul.f32 0.5, %v1316_v17 }
 0x7d0   : > { %v1318_v0 = vsub.f32 1.5, %v1317_v18 }
 0x7d2   : > { %v1319_v19 = vmul.f32 %v1740_v16, %v1318_v0 }
 0x7d4   : > { %v1323_v45 = vsel %vm1322_vm1, %v1740_v16, %v1319_v19 }
 0x7d5   : > { %v1324_v20 = vmul.f32 %v1323_v45, %v1307_v8 }
 0x7d7   : > { %v1326_v22 = vmul.f32 %v1325_v11, %v1324_v20 }
 0x7d9   : > { %v1328_v24 = vadd.f32 %v1327_v21, %v1326_v22 }
 0x7db   : > { %1329 = vst.msk [vmem:[%s296_s22] sm:$0xff] %vm324_vm0, %v1328_v24 }
 0x7dc   : > { %1768 = shalt.err (!%p1765_p3)
}
 0x7dd   : > { %1654 = dma.vmem_to_hbm [thread:$0]  (%p1903_p5), %s1344_s23, 128, %s1346_s24, %s1331_s9  }
 0x7de PF: > { %p1660_p4 = scmp.ge.s32.totalorder %s1803_s30, 2  ;;  %s1357_s13 = sand.u32 1, %s1791_s27  }
 0x7df   : > { %s1358_s20 = scalar_lea.sflag [#allocation3], %s1357_s13 }
 0x7e0   : > { %p1657_p7 = pnand %p1660_p4, %p1907_p6 }
 0x7e2   : > { %p1658_p8 = pneg %p1657_p7 }
 0x7e4   : > { %1786 = dma.done.wait (%p1658_p8), %s1358_s20, 128  }
 0x7e5   : > { %1788 = vsyncadd (%p1658_p8), %s1358_s20, 4294967168  ;;  %p18_p9 = scmp.ge.s32.totalorder %s1890_s11, 4   ;;  %s2305_s27 = smov %s1795_s28 }
 0x7e6   : > { %s2306_s28 = smov %s1799_s29  ;;  %s2307_s29 = smov %s1901_s14 }
 0x7e7   : > { %s2308_s30 = smov %s1890_s11  ;;  %20 = sbr.rel (!%p18_p9) target bundleno = 3 (0x3), region = 87 }
 0x7ec   :  { %1364 = vsyncpa [#allocation3], 1 }
 0x7ed   :  { %1366 = vsyncpa [#allocation3 + $0x1], 1 }

</bundles_post_ra>
